<compile_context>
chip_gen: v7x
topology: tpu7x:2x2x1
jax: 0.10.0
libtpu: 0.0.40
codegen_flags: <defaults>
</compile_context>

<pallas_src>
import functools

import jax
import jax.numpy as jnp
from jax.experimental import pallas as pl
from jax.experimental.pallas import tpu as pltpu


def _round_up(x, m):
    return ((x + m - 1) // m) * m


# Fixed batch tile (see header).  Constant => no per-batch-size recompiles of
# the tile geometry; 256 matches the v6e/v7x MXU M dimension and is fine on v5e.
_TB = 256


# ----------------------------------------------------------------------------
# Fused kernel: whole encoder + decoder for one batch tile.
# refs = (x, w0..w_{L-1}, b0..b_{L-1}, enc_out, dec_out)
# ----------------------------------------------------------------------------
def _fused_mlp_kernel(*refs, n_layers, n_enc, activations):
    x_ref = refs[0]
    w_refs = refs[1:1 + n_layers]
    b_refs = refs[1 + n_layers:1 + 2 * n_layers]
    enc_ref = refs[1 + 2 * n_layers]
    dec_ref = refs[2 + 2 * n_layers]

    # x arrives already bf16 from HBM; accumulate / bias / activate in f32.
    h = x_ref[...]
    y = None
    for i in range(n_layers):                        # unrolled at trace time
        y = jnp.dot(h, w_refs[i][...], preferred_element_type=jnp.float32)
        y = y + b_refs[i][...]                       # (1, Dout) f32 broadcast
        act = activations[i]
        if act == "relu":
            y = jnp.maximum(y, 0.0)
        elif act == "sigmoid":
            y = jax.nn.sigmoid(y)
        if i == n_enc - 1:                           # latent tap
            enc_ref[...] = y.astype(enc_ref.dtype)   # bf16 writeback
        if i < n_layers - 1:
            h = y.astype(jnp.bfloat16)               # bf16 MXU operand
    dec_ref[...] = y.astype(dec_ref.dtype)           # bf16 writeback


def _vmem_limit_bytes(dims, tb, n_enc):
    """Per-generation VMEM budget: weights/biases (single-buffered) +
    double-buffered x/enc/dec tiles + f32 intermediates, 2x headroom,
    clamped to ~3/4 of the physical VMEM of the current TPU generation."""
    n_layers = len(dims) - 1
    w_bytes = sum(dims[i] * dims[i + 1] * 2 for i in range(n_layers))   # bf16 x1
    b_bytes = sum(dims[i + 1] * 4 for i in range(n_layers))             # f32  x1
    io_bytes = 2 * tb * 2 * (dims[0] + dims[n_enc] + dims[-1])          # bf16 x2
    inter_bytes = 4 * tb * 4 * max(dims)                                # f32 acts
    est = 2 * (w_bytes + b_bytes + io_bytes + inter_bytes)
    try:
        cap = int(pltpu.get_tpu_info().vmem_capacity_bytes)
    except Exception:
        cap = 64 * 1024 * 1024        # conservative: v7x per-TC VMEM
    return int(min(max(est, cap * 3 // 4), cap))


@functools.partial(jax.jit, static_argnames=("dims", "acts", "n_enc", "tb"))
def _fused_forward(x_pad, weights, biases, *, dims, acts, n_enc, tb):
    """One pallas_call for the whole autoencoder.

    x_pad:   (B_pad, dims[0]) bf16, batch padded to a multiple of tb.
    weights: tuple of (dims[i], dims[i+1]) bf16 (zero-padded).
    biases:  tuple of (1, dims[i+1]) f32 (zero-padded).
    """
    B_pad = x_pad.shape[0]
    n_layers = len(weights)
    latent_pad = dims[n_enc]
    out_dim_pad = dims[-1]

    in_specs = [pl.BlockSpec((tb, dims[0]), lambda i: (i, 0))]
    # Weights / biases are grid-invariant: single-buffer them so Pallas does
    # not allocate a second pipeline buffer for every layer's parameters.
    for li in range(n_layers):
        in_specs.append(
            pl.BlockSpec((dims[li], dims[li + 1]), lambda i: (0, 0),
                         pipeline_mode=pl.Buffered(1)))
    for li in range(n_layers):
        in_specs.append(
            pl.BlockSpec((1, dims[li + 1]), lambda i: (0, 0),
                         pipeline_mode=pl.Buffered(1)))

    out_specs = (
        pl.BlockSpec((tb, latent_pad), lambda i: (i, 0)),
        pl.BlockSpec((tb, out_dim_pad), lambda i: (i, 0)),
    )

    kernel = functools.partial(
        _fused_mlp_kernel, n_layers=n_layers, n_enc=n_enc, activations=acts)

    enc, dec = pl.pallas_call(
        kernel,
        out_shape=(
            jax.ShapeDtypeStruct((B_pad, latent_pad), jnp.bfloat16),
            jax.ShapeDtypeStruct((B_pad, out_dim_pad), jnp.bfloat16),
        ),
        grid=(B_pad // tb,),
        in_specs=in_specs,
        out_specs=out_specs,
        compiler_params=pltpu.CompilerParams(
            dimension_semantics=("parallel",),      # batch tiles -> both TCs (v7x)
            vmem_limit_bytes=_vmem_limit_bytes(dims, tb, n_enc),
        ),
    )(x_pad, *weights, *biases)
    return enc, dec


# ----------------------------------------------------------------------------
# BaseModel-equivalent (MLP autoencoder) built on the fused Pallas kernel
# ----------------------------------------------------------------------------
class BaseModelPallas:
    def __init__(self, layer_sizes, width, height, classes, channels=1,
                 hyperparameters=None, seed=0):
        hyperparameters = hyperparameters or {}
        self.layer_sizes = list(layer_sizes)
        self.width = width
        self.height = height
        self.channels = channels
        self.classes = classes
        self.hyperparameters = hyperparameters
        self.encode_class = hyperparameters.get("encode_class", False)
        self.latent_type = "vector"

        in_dim = channels * width * height
        enc_dims = [in_dim] + list(layer_sizes)          # encoder MLP
        dec_dims = list(reversed(enc_dims))              # mirrored decoder
        dims = enc_dims + dec_dims[1:]                   # full feature chain
        self.dims = dims
        self.n_enc = len(enc_dims) - 1
        self.n_layers = len(dims) - 1
        # ReLU on all hidden layers, sigmoid on the reconstruction.
        # TODO(synk): BaseModel.forward is abstract; verify this activation
        #             list against the intended concrete model.
        self.acts = tuple(["relu"] * (self.n_layers - 1) + ["sigmoid"])
        # Lane-dense padded dims (multiples of 128).
        self.dims_pad = tuple(_round_up(d, 128) for d in dims)

        key = jax.random.PRNGKey(seed)
        weights, biases = [], []
        for i in range(self.n_layers):
            fan_in, fan_out = dims[i], dims[i + 1]
            key, kw, kb = jax.random.split(key, 3)
            bound = 1.0 / float(fan_in) ** 0.5           # torch.nn.Linear init
            w = jax.random.uniform(kw, (fan_in, fan_out), jnp.float32,
                                   minval=-bound, maxval=bound)
            b = jax.random.uniform(kb, (fan_out,), jnp.float32,
                                   minval=-bound, maxval=bound)
            # Zero-pad: padded rows/cols contribute nothing, so the math on
            # the valid slice matches the unpadded model (up to bf16 rounding
            # of the MXU operands).
            w_pad = jnp.zeros((self.dims_pad[i], self.dims_pad[i + 1]),
                              jnp.float32).at[:fan_in, :fan_out].set(w)
            b_pad = jnp.zeros((1, self.dims_pad[i + 1]),
                              jnp.float32).at[0, :fan_out].set(b)
            weights.append(w_pad.astype(jnp.bfloat16))   # bf16 MXU operands
            biases.append(b_pad)                         # f32 bias (post-acc)
        self.weights = tuple(weights)
        self.biases = tuple(biases)

    def get_latent_dim(self):
        return self.layer_sizes[-1]

    def forward(self, x, labels=None):
        # x: NCHW (B, C, H, W), flattened row-major like torch's x.view(B, -1)
        B = x.shape[0]
        in_dim = self.channels * self.height * self.width
        # Host-side bf16 cast: halves the x HBM->VMEM DMA + VMEM tile.
        x_flat = jnp.asarray(x).reshape(B, -1).astype(jnp.bfloat16)

        # Pad batch to the fixed tile and features to the lane-dense width.
        B_pad = _round_up(max(B, 1), _TB)
        x_pad = jnp.pad(x_flat,
                        ((0, B_pad - B), (0, self.dims_pad[0] - in_dim)))

        enc, dec = _fused_forward(
            x_pad, self.weights, self.biases,
            dims=self.dims_pad, acts=self.acts, n_enc=self.n_enc, tb=_TB)

        # Padded rows/cols of the raw buffers hold junk (e.g. sigmoid(0)=0.5);
        # only the sliced valid region below is valid to consume downstream.
        encoded = enc[:B, :self.layer_sizes[-1]].astype(jnp.float32)
        decoded = dec[:B, :in_dim].astype(jnp.float32).reshape(
            B, self.channels, self.height, self.width)
        return {"encoded": encoded, "decoded": decoded}


# ----------------------------------------------------------------------------
# Main
# ----------------------------------------------------------------------------
if __name__ == "__main__":
    B, C, H, W = 2, 1, 16, 16
    layer_sizes = [128, 32]            # encoder: 256 -> 128 -> 32 (latent)
    classes = [str(i) for i in range(10)]

    model = BaseModelPallas(layer_sizes, width=W, height=H, classes=classes,
                            channels=C, hyperparameters={}, seed=0)

    key = jax.random.PRNGKey(0)
    x = jax.random.uniform(key, (B, C, H, W), jnp.float32)   # image in [0, 1)
    labels = jnp.zeros((B,), jnp.int32)

    pack = model.forward(x, labels=labels)
    jax.block_until_ready(pack["decoded"])
    jax.block_until_ready(pack["encoded"])

    assert pack["decoded"].shape == (B, C, H, W)
    assert pack["encoded"].shape == (B, layer_sizes[-1])
    assert bool(jnp.all(jnp.isfinite(pack["decoded"])))
    assert bool(jnp.all(jnp.isfinite(pack["encoded"])))
    print("KERNEL_OK")
</pallas_src>

<mosaic_0001>
module attributes {stable_mosaic.version = 11 : i64} {
  func.func @_fused_mlp_kernel(%arg0: i32, %arg1: memref<256x256xbf16, #tpu.memory_space<vmem>>, %arg2: memref<256x128xbf16, #tpu.memory_space<vmem>>, %arg3: memref<128x128xbf16, #tpu.memory_space<vmem>>, %arg4: memref<128x128xbf16, #tpu.memory_space<vmem>>, %arg5: memref<128x256xbf16, #tpu.memory_space<vmem>>, %arg6: memref<1x128xf32, #tpu.memory_space<vmem>>, %arg7: memref<1x128xf32, #tpu.memory_space<vmem>>, %arg8: memref<1x128xf32, #tpu.memory_space<vmem>>, %arg9: memref<1x256xf32, #tpu.memory_space<vmem>>, %arg10: memref<256x128xbf16, #tpu.memory_space<vmem>>, %arg11: memref<256x256xbf16, #tpu.memory_space<vmem>>) attributes {dimension_semantics = [#tpu.dimension_semantics<parallel>], iteration_bounds = array<i64: 1>, scalar_prefetch = 0 : i64, scratch_operands = 0 : i64, tpu.core_type = #tpu.core_type<tc>, window_params = [{transform_indices = @transform_0, window_bounds = array<i64: 256, 256>}, {pipeline_mode = #tpu.pipeline_mode<synchronous>, transform_indices = @transform_1, window_bounds = array<i64: 256, 128>}, {pipeline_mode = #tpu.pipeline_mode<synchronous>, transform_indices = @transform_2, window_bounds = array<i64: 128, 128>}, {pipeline_mode = #tpu.pipeline_mode<synchronous>, transform_indices = @transform_3, window_bounds = array<i64: 128, 128>}, {pipeline_mode = #tpu.pipeline_mode<synchronous>, transform_indices = @transform_4, window_bounds = array<i64: 128, 256>}, {pipeline_mode = #tpu.pipeline_mode<synchronous>, transform_indices = @transform_5, window_bounds = array<i64: 1, 128>}, {pipeline_mode = #tpu.pipeline_mode<synchronous>, transform_indices = @transform_6, window_bounds = array<i64: 1, 128>}, {pipeline_mode = #tpu.pipeline_mode<synchronous>, transform_indices = @transform_7, window_bounds = array<i64: 1, 128>}, {pipeline_mode = #tpu.pipeline_mode<synchronous>, transform_indices = @transform_8, window_bounds = array<i64: 1, 256>}, {transform_indices = @transform_9, window_bounds = array<i64: 256, 128>}, {transform_indices = @transform_10, window_bounds = array<i64: 256, 256>}]} {
    %c0 = arith.constant 0 : index
    %c0_0 = arith.constant 0 : index
    %0 = vector.load %arg1[%c0, %c0_0] : memref<256x256xbf16, #tpu.memory_space<vmem>>, vector<256x256xbf16>
    %c0_1 = arith.constant 0 : index
    %c0_2 = arith.constant 0 : index
    %1 = vector.load %arg2[%c0_1, %c0_2] : memref<256x128xbf16, #tpu.memory_space<vmem>>, vector<256x128xbf16>
    %cst = arith.constant dense<0.000000e+00> : vector<256x128xf32>
    %2 = tpu.matmul %0, %1, %cst {dimension_numbers = #tpu.dot_dimension_numbers<[1], [0], [0], [1], [0, 0, 1, 1], [], []>} : vector<256x256xbf16>, vector<256x128xbf16>, vector<256x128xf32> -> vector<256x128xf32>
    %c0_3 = arith.constant 0 : index
    %c0_4 = arith.constant 0 : index
    %3 = vector.load %arg6[%c0_3, %c0_4] : memref<1x128xf32, #tpu.memory_space<vmem>>, vector<1x128xf32>
    %4 = vector.broadcast %3 : vector<1x128xf32> to vector<256x128xf32>
    %5 = arith.addf %2, %4 : vector<256x128xf32>
    %cst_5 = arith.constant 0.000000e+00 : f32
    %6 = vector.broadcast %cst_5 : f32 to vector<256x128xf32>
    %7 = arith.maximumf %5, %6 : vector<256x128xf32>
    %8 = arith.truncf %7 : vector<256x128xf32> to vector<256x128xbf16>
    %c0_6 = arith.constant 0 : index
    %c0_7 = arith.constant 0 : index
    %9 = vector.load %arg3[%c0_6, %c0_7] : memref<128x128xbf16, #tpu.memory_space<vmem>>, vector<128x128xbf16>
    %cst_8 = arith.constant dense<0.000000e+00> : vector<256x128xf32>
    %10 = tpu.matmul %8, %9, %cst_8 {dimension_numbers = #tpu.dot_dimension_numbers<[1], [0], [0], [1], [0, 0, 1, 1], [], []>} : vector<256x128xbf16>, vector<128x128xbf16>, vector<256x128xf32> -> vector<256x128xf32>
    %c0_9 = arith.constant 0 : index
    %c0_10 = arith.constant 0 : index
    %11 = vector.load %arg7[%c0_9, %c0_10] : memref<1x128xf32, #tpu.memory_space<vmem>>, vector<1x128xf32>
    %12 = vector.broadcast %11 : vector<1x128xf32> to vector<256x128xf32>
    %13 = arith.addf %10, %12 : vector<256x128xf32>
    %cst_11 = arith.constant 0.000000e+00 : f32
    %14 = vector.broadcast %cst_11 : f32 to vector<256x128xf32>
    %15 = arith.maximumf %13, %14 : vector<256x128xf32>
    %16 = arith.truncf %15 : vector<256x128xf32> to vector<256x128xbf16>
    %c0_12 = arith.constant 0 : index
    %c0_13 = arith.constant 0 : index
    %17 = vector.load %arg10[%c0_12, %c0_13] : memref<256x128xbf16, #tpu.memory_space<vmem>>, vector<256x128xbf16>
    tpu.vector_store %arg10[%c0_12, %c0_13], %16 {strides = array<i32>} : memref<256x128xbf16, #tpu.memory_space<vmem>>, vector<256x128xbf16>,
    %18 = arith.truncf %15 : vector<256x128xf32> to vector<256x128xbf16>
    %c0_14 = arith.constant 0 : index
    %c0_15 = arith.constant 0 : index
    %19 = vector.load %arg4[%c0_14, %c0_15] : memref<128x128xbf16, #tpu.memory_space<vmem>>, vector<128x128xbf16>
    %cst_16 = arith.constant dense<0.000000e+00> : vector<256x128xf32>
    %20 = tpu.matmul %18, %19, %cst_16 {dimension_numbers = #tpu.dot_dimension_numbers<[1], [0], [0], [1], [0, 0, 1, 1], [], []>} : vector<256x128xbf16>, vector<128x128xbf16>, vector<256x128xf32> -> vector<256x128xf32>
    %c0_17 = arith.constant 0 : index
    %c0_18 = arith.constant 0 : index
    %21 = vector.load %arg8[%c0_17, %c0_18] : memref<1x128xf32, #tpu.memory_space<vmem>>, vector<1x128xf32>
    %22 = vector.broadcast %21 : vector<1x128xf32> to vector<256x128xf32>
    %23 = arith.addf %20, %22 : vector<256x128xf32>
    %cst_19 = arith.constant 0.000000e+00 : f32
    %24 = vector.broadcast %cst_19 : f32 to vector<256x128xf32>
    %25 = arith.maximumf %23, %24 : vector<256x128xf32>
    %26 = arith.truncf %25 : vector<256x128xf32> to vector<256x128xbf16>
    %c0_20 = arith.constant 0 : index
    %c0_21 = arith.constant 0 : index
    %27 = vector.load %arg5[%c0_20, %c0_21] : memref<128x256xbf16, #tpu.memory_space<vmem>>, vector<128x256xbf16>
    %cst_22 = arith.constant dense<0.000000e+00> : vector<256x256xf32>
    %28 = tpu.matmul %26, %27, %cst_22 {dimension_numbers = #tpu.dot_dimension_numbers<[1], [0], [0], [1], [0, 0, 1, 1], [], []>} : vector<256x128xbf16>, vector<128x256xbf16>, vector<256x256xf32> -> vector<256x256xf32>
    %c0_23 = arith.constant 0 : index
    %c0_24 = arith.constant 0 : index
    %29 = vector.load %arg9[%c0_23, %c0_24] : memref<1x256xf32, #tpu.memory_space<vmem>>, vector<1x256xf32>
    %30 = vector.broadcast %29 : vector<1x256xf32> to vector<256x256xf32>
    %31 = arith.addf %28, %30 : vector<256x256xf32>
    %32 = arith.negf %31 : vector<256x256xf32>
    %33 = math.exp %32 : vector<256x256xf32>
    %cst_25 = arith.constant 1.000000e+00 : f32
    %34 = vector.broadcast %cst_25 : f32 to vector<256x256xf32>
    %35 = arith.addf %34, %33 : vector<256x256xf32>
    %36 = arith.divf %34, %35 : vector<256x256xf32>
    %37 = arith.truncf %36 : vector<256x256xf32> to vector<256x256xbf16>
    %c0_26 = arith.constant 0 : index
    %c0_27 = arith.constant 0 : index
    %38 = vector.load %arg11[%c0_26, %c0_27] : memref<256x256xbf16, #tpu.memory_space<vmem>>, vector<256x256xbf16>
    tpu.vector_store %arg11[%c0_26, %c0_27], %37 {strides = array<i32>} : memref<256x256xbf16, #tpu.memory_space<vmem>>, vector<256x256xbf16>,
    return
  }
  func.func @transform_0(%arg0: i32) -> (i32, i32) {
    %c0_i32 = arith.constant 0 : i32
    %c0_i32_0 = arith.constant 0 : i32
    return %arg0, %c0_i32 : i32, i32
  }
  func.func @transform_1(%arg0: i32) -> (i32, i32) {
    %c0_i32 = arith.constant 0 : i32
    %c0_i32_0 = arith.constant 0 : i32
    %c0_i32_1 = arith.constant 0 : i32
    return %c0_i32, %c0_i32_0 : i32, i32
  }
  func.func @transform_2(%arg0: i32) -> (i32, i32) {
    %c0_i32 = arith.constant 0 : i32
    %c0_i32_0 = arith.constant 0 : i32
    %c0_i32_1 = arith.constant 0 : i32
    return %c0_i32, %c0_i32_0 : i32, i32
  }
  func.func @transform_3(%arg0: i32) -> (i32, i32) {
    %c0_i32 = arith.constant 0 : i32
    %c0_i32_0 = arith.constant 0 : i32
    %c0_i32_1 = arith.constant 0 : i32
    return %c0_i32, %c0_i32_0 : i32, i32
  }
  func.func @transform_4(%arg0: i32) -> (i32, i32) {
    %c0_i32 = arith.constant 0 : i32
    %c0_i32_0 = arith.constant 0 : i32
    %c0_i32_1 = arith.constant 0 : i32
    return %c0_i32, %c0_i32_0 : i32, i32
  }
  func.func @transform_5(%arg0: i32) -> (i32, i32) {
    %c0_i32 = arith.constant 0 : i32
    %c0_i32_0 = arith.constant 0 : i32
    %c0_i32_1 = arith.constant 0 : i32
    return %c0_i32, %c0_i32_0 : i32, i32
  }
  func.func @transform_6(%arg0: i32) -> (i32, i32) {
    %c0_i32 = arith.constant 0 : i32
    %c0_i32_0 = arith.constant 0 : i32
    %c0_i32_1 = arith.constant 0 : i32
    return %c0_i32, %c0_i32_0 : i32, i32
  }
  func.func @transform_7(%arg0: i32) -> (i32, i32) {
    %c0_i32 = arith.constant 0 : i32
    %c0_i32_0 = arith.constant 0 : i32
    %c0_i32_1 = arith.constant 0 : i32
    return %c0_i32, %c0_i32_0 : i32, i32
  }
  func.func @transform_8(%arg0: i32) -> (i32, i32) {
    %c0_i32 = arith.constant 0 : i32
    %c0_i32_0 = arith.constant 0 : i32
    %c0_i32_1 = arith.constant 0 : i32
    return %c0_i32, %c0_i32_0 : i32, i32
  }
  func.func @transform_9(%arg0: i32) -> (i32, i32) {
    %c0_i32 = arith.constant 0 : i32
    %c0_i32_0 = arith.constant 0 : i32
    return %arg0, %c0_i32 : i32, i32
  }
  func.func @transform_10(%arg0: i32) -> (i32, i32) {
    %c0_i32 = arith.constant 0 : i32
    %c0_i32_0 = arith.constant 0 : i32
    return %arg0, %c0_i32 : i32, i32
  }
}

</mosaic_0001>

<bundles_post_ra>
// kernel: _fused_forward.1
= control target key start
LH: loop header
LB: loop body
LE: loop exit
PB: predicated region body
PF: predicated region fallthrough
CT: control target
= control target key end

     0   :  { %16 = vsyncpa [#allocation3], 0  ;;  %s3856_s0 = inlined_call_operand.hbm [shape: bf16[256,256], index: 0, kind: input, shape index: {}]   ;;  %s3857_s1 = inlined_call_operand.hbm [shape: bf16[256,128], index: 1, kind: input, shape index: {}]   ;;  %s3858_s2 = inlined_call_operand.hbm [shape: bf16[128,128], index: 2, kind: input, shape index: {}]   ;;  %s3859_s3 = inlined_call_operand.hbm [shape: bf16[128,128], index: 3, kind: input, shape index: {}]   ;;  %s3860_s4 = inlined_call_operand.hbm [shape: bf16[128,256], index: 4, kind: input, shape index: {}]   ;;  %s3861_s5 = inlined_call_operand.vmem [shape: f32[1,128], index: 5, kind: input, shape index: {}]   ;;  %s3862_s6 = inlined_call_operand.vmem [shape: f32[1,128], index: 6, kind: input, shape index: {}]   ;;  %s3863_s7 = inlined_call_operand.vmem [shape: f32[1,128], index: 7, kind: input, shape index: {}]   ;;  %s3864_s8 = inlined_call_operand.vmem [shape: f32[1,256], index: 8, kind: input, shape index: {}]   ;;  %s3865_s9 = inlined_call_operand.hbm [shape: bf16[256,128], index: 9, kind: output, shape index: {0}]   ;;  %s3866_s10 = inlined_call_operand.hbm [shape: bf16[256,256], index: 10, kind: output, shape index: {1}]  }
   0x1   :  { %17 = vsyncpa [#allocation6], 0 }
   0x2   :  { %18 = vsyncpa [#allocation9], 0 }
   0x3   :  { %19 = vsyncpa [#allocation4], 0 }
   0x4   :  { %20 = vsyncpa [#allocation13], 0  ;;  %s3467_s13 = smov [#allocation5]   ;;  %s3303_s17 = scalar_lea.hbm %s3857_s1, 2048 }
   0x5   :  { %s38_s14 = sshll.u32 %s3467_s13, 4  ;;  %p3304_p0 = scmp.ne.s32.totalorder %s3857_s1, %s3303_s17  ;;  %s39_s14 = int_to_ptr.vmem [resolvable:$true] %s38_s14 }
   0x6   :  { %p3307_p1 = scmp.lt.u32.totalorder %s3303_s17, %s3857_s1 }
   0x8   :  { %p3309_p2 = pnand %p3307_p1, %p3304_p0 }
   0xa   :  { %3312 = shalt.err (!%p3309_p2)
}
   0xb   :  { %s3313_s22 = scalar_lea.vmem %s39_s14, 2048  ;;  %p3318_p4 = scmp.lt.s32.totalorder %s39_s14, %s39_s14 }
   0xc   :  { %p3314_p3 = scmp.ne.s32.totalorder %s39_s14, %s3313_s22  ;;  %p3319_p5 = scmp.lt.s32.totalorder %s3313_s22, %s3313_s22 }
   0xe   :  { %p3320_p6 = por %p3319_p5, %p3318_p4 }
  0x10   :  { %p3321_p7 = pnand %p3320_p6, %p3314_p3 }
  0x12   :  { %3324 = shalt.err (!%p3321_p7)
}
  0x13   :  { %s3468_s23 = smov 64   ;;  %s3469_s24 = smov 4  }
  0x14   :  { %44 = dma.hbm_to_vmem [thread:$0]  %s3857_s1, 2048, %s39_s14, [#allocation6], %s3468_s23, %s3468_s23, %s3469_s24  }
  0x15   :  { %s3470_s27 = smov [#allocation8]   ;;  %s3471_s29 = smov [#allocation2]  }
  0x16   :  { %s62_s28 = sshll.u32 %s3470_s27, 4  ;;  %s26_s30 = sshll.u32 %s3471_s29, 4  ;;  %s63_s28 = int_to_ptr.vmem [resolvable:$true] %s62_s28  ;;  %s27_s30 = int_to_ptr.vmem [resolvable:$true] %s26_s30 }
  0x17   :  { %s3325_s13 = scalar_lea.hbm %s3859_s3, 1024 }
  0x18   :  { %p3326_p8 = scmp.ne.s32.totalorder %s3859_s3, %s3325_s13  ;;  %p3329_p9 = scmp.lt.u32.totalorder %s3325_s13, %s3859_s3 }
  0x1a   :  { %p3331_p10 = pnand %p3329_p9, %p3326_p8 }
  0x1c   :  { %3334 = shalt.err (!%p3331_p10)
}
  0x1d   :  { %s3335_s1 = scalar_lea.vmem %s63_s28, 1024  ;;  %p3340_p12 = scmp.lt.s32.totalorder %s63_s28, %s63_s28 }
  0x1e   :  { %p3336_p11 = scmp.ne.s32.totalorder %s63_s28, %s3335_s1  ;;  %p3341_p13 = scmp.lt.s32.totalorder %s3335_s1, %s3335_s1 }
  0x20   :  { %p3342_p0 = por %p3341_p13, %p3340_p12 }
  0x22   :  { %p3343_p1 = pnand %p3342_p0, %p3336_p11 }
  0x24   :  { %3346 = shalt.err (!%p3343_p1)
}
  0x25   :  { %68 = dma.hbm_to_vmem [thread:$0]  %s3859_s3, 1024, %s63_s28, [#allocation9], %s3468_s23, %s3468_s23, %s3469_s24  }
  0x26   :  { %s3347_s22 = scalar_lea.hbm %s3856_s0, 4096 }
  0x27   :  { %p3348_p2 = scmp.ne.s32.totalorder %s3856_s0, %s3347_s22  ;;  %p3351_p3 = scmp.lt.u32.totalorder %s3347_s22, %s3856_s0 }
  0x29   :  { %p3353_p4 = pnand %p3351_p3, %p3348_p2 }
  0x2b   :  { %3356 = shalt.err (!%p3353_p4)
}
  0x2c   :  { %s3357_s11 = scalar_lea.vmem %s27_s30, 4096  ;;  %p3362_p6 = scmp.lt.s32.totalorder %s27_s30, %s27_s30 }
  0x2d   :  { %p3358_p5 = scmp.ne.s32.totalorder %s27_s30, %s3357_s11  ;;  %p3363_p7 = scmp.lt.s32.totalorder %s3357_s11, %s3357_s11 }
  0x2f   :  { %p3364_p8 = por %p3363_p7, %p3362_p6 }
  0x31   :  { %p3365_p9 = pnand %p3364_p8, %p3358_p5 }
  0x33   :  { %3368 = shalt.err (!%p3365_p9)
}
  0x34   :  { %s3472_s3 = smov 128   ;;  %s3473_s28 = smov 8  }
  0x35   :  { %32 = dma.hbm_to_vmem [thread:$0]  %s3856_s0, 4096, %s27_s30, [#allocation3], %s3472_s3, %s3472_s3, %s3473_s28  }
  0x36   :  { %s3474_s15 = smov [#allocation7]   ;;  %s3475_s17 = smov [#allocation10]  }
  0x37   :  { %s50_s16 = sshll.u32 %s3474_s15, 4  ;;  %s74_s18 = sshll.u32 %s3475_s17, 4  ;;  %s51_s16 = int_to_ptr.vmem [resolvable:$true] %s50_s16  ;;  %s75_s18 = int_to_ptr.vmem [resolvable:$true] %s74_s18 }
  0x38   :  { %s3369_s19 = scalar_lea.hbm %s3858_s2, 1024 }
  0x39   :  { %p3370_p10 = scmp.ne.s32.totalorder %s3858_s2, %s3369_s19  ;;  %p3373_p11 = scmp.lt.u32.totalorder %s3369_s19, %s3858_s2 }
  0x3b   :  { %p3375_p12 = pnand %p3373_p11, %p3370_p10 }
  0x3d   :  { %3378 = shalt.err (!%p3375_p12)
}
  0x3e   :  { %s3379_s0 = scalar_lea.vmem %s51_s16, 1024  ;;  %p3384_p0 = scmp.lt.s32.totalorder %s51_s16, %s51_s16 }
  0x3f   :  { %p3380_p13 = scmp.ne.s32.totalorder %s51_s16, %s3379_s0  ;;  %p3385_p1 = scmp.lt.s32.totalorder %s3379_s0, %s3379_s0 }
  0x41   :  { %p3386_p2 = por %p3385_p1, %p3384_p0 }
  0x43   :  { %p3387_p3 = pnand %p3386_p2, %p3380_p13 }
  0x45   :  { %3390 = shalt.err (!%p3387_p3)
}
  0x46   :  { %56 = dma.hbm_to_vmem [thread:$0]  %s3858_s2, 1024, %s51_s16, [#allocation6], %s3468_s23, %s3468_s23, %s3469_s24  }
  0x47   :  { %s3391_s11 = scalar_lea.hbm %s3860_s4, 2048 }
  0x48   :  { %p3392_p4 = scmp.ne.s32.totalorder %s3860_s4, %s3391_s11  ;;  %p3395_p5 = scmp.lt.u32.totalorder %s3391_s11, %s3860_s4 }
  0x4a   :  { %p3397_p6 = pnand %p3395_p5, %p3392_p4 }
  0x4c   :  { %3400 = shalt.err (!%p3397_p6)
}
  0x4d   :  { %s3401_s1 = scalar_lea.vmem %s75_s18, 2048  ;;  %p3406_p8 = scmp.lt.s32.totalorder %s75_s18, %s75_s18 }
  0x4e   :  { %p3402_p7 = scmp.ne.s32.totalorder %s75_s18, %s3401_s1  ;;  %p3407_p9 = scmp.lt.s32.totalorder %s3401_s1, %s3401_s1 }
  0x50   :  { %p3408_p10 = por %p3407_p9, %p3406_p8 }
  0x52   :  { %p3409_p11 = pnand %p3408_p10, %p3402_p7 }
  0x54   :  { %3412 = shalt.err (!%p3409_p11)
}
  0x55   :  { %80 = dma.hbm_to_vmem [thread:$0]  %s3860_s4, 2048, %s75_s18, [#allocation9], %s3472_s3, %s3472_s3, %s3473_s28  }
  0x56   :  { %3457 = dma.done.wait [#allocation3], 4096  }
  0x57   :  { %3458 = vsyncadd [#allocation3], 4294963200 }
  0x58   :  { %3459 = dma.done.wait [#allocation6], 3072  }
  0x59   :  { %3460 = vsyncadd [#allocation6], 4294964224 }
  0x5a   :  { %3461 = dma.done.wait [#allocation9], 3072  }
  0x5b   :  { %3462 = vsyncadd [#allocation9], 4294964224  ;;  %v2943_v0 = vld [vmem:[#allocation5 + $0x40] sm:$0xff]   ;;  %v2945_v2 = vld [vmem:[#allocation5 + $0x48] sm:$0xff]  }
  0x5c   :  { %v2944_v1 = vld [vmem:[#allocation5] sm:$0xff]   ;;  %2659 = vmatprep.subr.bf16.mxu0 %v2943_v0  ;;  %2915 = vmatprep.subr.bf16.mxu1 %v2943_v0  ;;  %v2946_v3 = vld [vmem:[#allocation5 + $0x8] sm:$0xff]   ;;  %v2947_v4 = vld [vmem:[#allocation5 + $0x50] sm:$0xff]  }
  0x5d   :  { %2660 = vmatpush3.bf16.msra.mxu0 %v2944_v1  ;;  %2923 = vmatpush3.bf16.msra.mxu1 %v2944_v1  ;;  %v2948_v5 = vld [vmem:[#allocation5 + $0x10] sm:$0xff]   ;;  %v2949_v6 = vld [vmem:[#allocation5 + $0x58] sm:$0xff]   ;;  %v2951_v8 = vld [vmem:[#allocation5 + $0x60] sm:$0xff]  }
  0x5e   :  { %2661 = vmatprep.subr.bf16.mxu0 %v2945_v2  ;;  %2916 = vmatprep.subr.bf16.mxu1 %v2945_v2  ;;  %v2950_v7 = vld [vmem:[#allocation5 + $0x18] sm:$0xff]   ;;  %v2952_v9 = vld [vmem:[#allocation5 + $0x20] sm:$0xff]   ;;  %v2953_v10 = vld [vmem:[#allocation5 + $0x68] sm:$0xff]  }
  0x5f   :  { %v2961_v11 = vld [vmem:[#allocation2 + $0x4] ss:$8 sps:$4 sm:$0xff]   ;;  %v2955_v13 = vld [vmem:[#allocation5 + $0x70] sm:$0xff]   ;;  %v2957_v15 = vld [vmem:[#allocation5 + $0x78] sm:$0xff]  }
  0x60   :  { %v2954_v12 = vld [vmem:[#allocation5 + $0x28] sm:$0xff]   ;;  %464 = vmatprep.mubr.bf16.mxu0 %v2961_v11  ;;  %v2956_v14 = vld [vmem:[#allocation5 + $0x30] sm:$0xff]   ;;  %v2958_v17 = vld [vmem:[#allocation5 + $0x38] sm:$0xff]  }
  0x61   :  { %2662 = vmatpush3.bf16.msra.mxu0 %v2946_v3  ;;  %2924 = vmatpush3.bf16.msra.mxu1 %v2946_v3  ;;  %v2982_v16 = vld [vmem:[#allocation2 + $0x84] ss:$8 sps:$4 sm:$0xff]   ;;  %v2959_v18 = vld [vmem:[#allocation2] ss:$8 sps:$4 sm:$0xff]   ;;  %v2962_v19 = vld [vmem:[#allocation2 + $0x14] ss:$8 sps:$4 sm:$0xff]  }
  0x62   :  { %2663 = vmatprep.subr.bf16.mxu0 %v2947_v4  ;;  %2917 = vmatprep.subr.bf16.mxu1 %v2947_v4  ;;  %v2980_v20 = vld [vmem:[#allocation2 + $0x80] ss:$8 sps:$4 sm:$0xff]   ;;  %v2986_v21 = vld [vmem:[#allocation2 + $0x94] ss:$8 sps:$4 sm:$0xff]   ;;  %v2964_v22 = vld [vmem:[#allocation2 + $0x10] ss:$8 sps:$4 sm:$0xff]  }
  0x63   :  { %528 = vmatprep.mubr.bf16.mxu1 %v2982_v16  ;;  %v2965_v23 = vld [vmem:[#allocation2 + $0x24] ss:$8 sps:$4 sm:$0xff]   ;;  %v2988_v24 = vld [vmem:[#allocation2 + $0x90] ss:$8 sps:$4 sm:$0xff]   ;;  %v2967_v29 = vld [vmem:[#allocation2 + $0x20] ss:$8 sps:$4 sm:$0xff]  }
  0x64   :  { %v3007_v25 = vld [vmem:[#allocation7] sm:$0xff]   ;;  %v3008_v26 = vld [vmem:[#allocation7 + $0x8] sm:$0xff]   ;;  %v3009_v28 = vld [vmem:[#allocation7 + $0x10] sm:$0xff]  }
  0x65   :  { %2664 = vmatpush3.bf16.msra.mxu0 %v2948_v5  ;;  %2925 = vmatpush3.bf16.msra.mxu1 %v2948_v5  ;;  %v2989_v27 = vld [vmem:[#allocation2 + $0xa4] ss:$8 sps:$4 sm:$0xff]   ;;  %v3010_v30 = vld [vmem:[#allocation7 + $0x18] sm:$0xff]   ;;  %v2991_v32 = vld [vmem:[#allocation2 + $0xa0] ss:$8 sps:$4 sm:$0xff]  }
  0x66   :  { %2665 = vmatprep.subr.bf16.mxu0 %v2949_v6  ;;  %2918 = vmatprep.subr.bf16.mxu1 %v2949_v6  ;;  %v2968_v31 = vld [vmem:[#allocation2 + $0x34] ss:$8 sps:$4 sm:$0xff]   ;;  %v3011_v34 = vld [vmem:[#allocation7 + $0x20] sm:$0xff]   ;;  %v2970_v35 = vld [vmem:[#allocation2 + $0x30] ss:$8 sps:$4 sm:$0xff]  }
  0x67   :  { %v2992_v33 = vld [vmem:[#allocation2 + $0xb4] ss:$8 sps:$4 sm:$0xff]   ;;  %v3012_v36 = vld [vmem:[#allocation7 + $0x28] sm:$0xff]   ;;  %v2994_v38 = vld [vmem:[#allocation2 + $0xb0] ss:$8 sps:$4 sm:$0xff]  }
  0x68   :  { %v2971_v37 = vld [vmem:[#allocation2 + $0x44] ss:$8 sps:$4 sm:$0xff]   ;;  %v2973_v40 = vld [vmem:[#allocation2 + $0x40] ss:$8 sps:$4 sm:$0xff]   ;;  %v2974_v41 = vld [vmem:[#allocation2 + $0x54] ss:$8 sps:$4 sm:$0xff]  }
  0x69   :  { %2666 = vmatpush3.bf16.msra.mxu0 %v2950_v7  ;;  %2926 = vmatpush3.bf16.msra.mxu1 %v2950_v7  ;;  %v2995_v39 = vld [vmem:[#allocation2 + $0xc4] ss:$8 sps:$4 sm:$0xff]   ;;  %v2997_v42 = vld [vmem:[#allocation2 + $0xc0] ss:$8 sps:$4 sm:$0xff]   ;;  %v2998_v43 = vld [vmem:[#allocation2 + $0xd4] ss:$8 sps:$4 sm:$0xff]  }
  0x6a   :  { %2667 = vmatprep.subr.bf16.mxu0 %v2951_v8  ;;  %2919 = vmatprep.subr.bf16.mxu1 %v2951_v8  ;;  %v2976_v44 = vld [vmem:[#allocation2 + $0x50] ss:$8 sps:$4 sm:$0xff]   ;;  %v2977_v45 = vld [vmem:[#allocation2 + $0x64] ss:$8 sps:$4 sm:$0xff]   ;;  %v2979_v48 = vld [vmem:[#allocation2 + $0x60] ss:$8 sps:$4 sm:$0xff]  }
  0x6b   :  { %v3000_v46 = vld [vmem:[#allocation2 + $0xd0] ss:$8 sps:$4 sm:$0xff]   ;;  %v3001_v47 = vld [vmem:[#allocation2 + $0xe4] ss:$8 sps:$4 sm:$0xff]   ;;  %v2983_v49 = vld [vmem:[#allocation2 + $0x74] ss:$8 sps:$4 sm:$0xff]  }
  0x6c   :  { %v3003_v50 = vld [vmem:[#allocation2 + $0xe0] ss:$8 sps:$4 sm:$0xff]   ;;  %v3004_v51 = vld [vmem:[#allocation2 + $0xf4] ss:$8 sps:$4 sm:$0xff]   ;;  %v2985_v52 = vld [vmem:[#allocation2 + $0x70] ss:$8 sps:$4 sm:$0xff]  }
  0x6d   :  { %2668 = vmatpush3.bf16.msra.mxu0 %v2952_v9  ;;  %2927 = vmatpush3.bf16.msra.mxu1 %v2952_v9  ;;  %v3006_v53 = vld [vmem:[#allocation2 + $0xf0] ss:$8 sps:$4 sm:$0xff]   ;;  %v3609_v56 = vld [vmem:[#allocation8] sm:$0xff]  }
  0x6e   :  { %2669 = vmatprep.subr.bf16.mxu0 %v2953_v10  ;;  %2920 = vmatprep.subr.bf16.mxu1 %v2953_v10  ;;  %v3013_v54 = vld [vmem:[#allocation7 + $0x30] sm:$0xff]   ;;  %v3014_v55 = vld [vmem:[#allocation7 + $0x38] sm:$0xff]   ;;  %v3615_v58 = vld [vmem:[%s3861_s5] ss:$0 sm:$0xff] }
  0x71   :  { %2670 = vmatpush3.bf16.msra.mxu0 %v2954_v12  ;;  %2928 = vmatpush3.bf16.msra.mxu1 %v2954_v12 }
  0x72   :  { %2671 = vmatprep.subr.bf16.mxu0 %v2955_v13  ;;  %2921 = vmatprep.subr.bf16.mxu1 %v2955_v13 }
  0x75   :  { %2672 = vmatpush3.bf16.msra.mxu0 %v2956_v14  ;;  %2929 = vmatpush3.bf16.msra.mxu1 %v2956_v14 }
  0x76   :  { %2673 = vmatprep.subr.bf16.mxu0 %v2957_v15  ;;  %2922 = vmatprep.subr.bf16.mxu1 %v2957_v15 }
  0x79   :  { %2674 = vmatpush3.bf16.msra.mxu0 %v2958_v17  ;;  %2930 = vmatpush3.bf16.msra.mxu1 %v2958_v17 }
  0x7a   :  { %2819 = vmatprep.subr.bf16.mxu1 %v3007_v25 }
  0x7c   :  { %465 = vmatmul.mubr.bf16.vlgmr.msra.gmra.mrb[0].mxu0 %v2959_v18  ;;  %529 = vmatmul.mubr.bf16.vlgmr.msra.gmra.mrb[0].mxu1 %v2980_v20 }
  0x7d   :  { %472 = vmatprep.mubr.bf16.mxu0 %v2962_v19  ;;  %536 = vmatprep.mubr.bf16.mxu1 %v2986_v21 }
  0x7e   :  { %2820 = vmatpush3.bf16.msra.mxu1 %v3007_v25 }
  0x7f   :  { %2821 = vmatprep.subr.bf16.mxu1 %v3008_v26 }
  0x82   :  { %2822 = vmatpush3.bf16.msra.mxu1 %v3008_v26 }
  0x83   :  { %2823 = vmatprep.subr.bf16.mxu1 %v3009_v28 }
  0x84   :  { %473 = vmatmul.mubr.bf16.gmra.mrb[4].mxu0 %v2964_v22  ;;  %537 = vmatmul.mubr.bf16.gmra.mrb[4].mxu1 %v2988_v24 }
  0x85   :  { %480 = vmatprep.mubr.bf16.mxu0 %v2965_v23  ;;  %544 = vmatprep.mubr.bf16.mxu1 %v2989_v27 }
  0x86   :  { %2824 = vmatpush3.bf16.msra.mxu1 %v3009_v28 }
  0x87   :  { %2825 = vmatprep.subr.bf16.mxu1 %v3010_v30 }
  0x8a   :  { %2826 = vmatpush3.bf16.msra.mxu1 %v3010_v30 }
  0x8b   :  { %2827 = vmatprep.subr.bf16.mxu1 %v3011_v34 }
  0x8c   :  { %481 = vmatmul.mubr.bf16.gmra.mrb[8].mxu0 %v2967_v29  ;;  %545 = vmatmul.mubr.bf16.gmra.mrb[8].mxu1 %v2991_v32 }
  0x8d   :  { %488 = vmatprep.mubr.bf16.mxu0 %v2968_v31  ;;  %552 = vmatprep.mubr.bf16.mxu1 %v2992_v33 }
  0x8e   :  { %2828 = vmatpush3.bf16.msra.mxu1 %v3011_v34 }
  0x8f   :  { %2829 = vmatprep.subr.bf16.mxu1 %v3012_v36 }
  0x92   :  { %2830 = vmatpush3.bf16.msra.mxu1 %v3012_v36 }
  0x93   :  { %2831 = vmatprep.subr.bf16.mxu1 %v3013_v54 }
  0x94   :  { %489 = vmatmul.mubr.bf16.gmra.mrb[12].mxu0 %v2970_v35  ;;  %553 = vmatmul.mubr.bf16.gmra.mrb[12].mxu1 %v2994_v38 }
  0x95   :  { %496 = vmatprep.mubr.bf16.mxu0 %v2971_v37  ;;  %560 = vmatprep.mubr.bf16.mxu1 %v2995_v39 }
  0x96   :  { %2832 = vmatpush3.bf16.msra.mxu1 %v3013_v54  ;;  %v3017_v54 = vld [vmem:[#allocation8 + $0x10] sm:$0xff]  }
  0x97   :  { %2833 = vmatprep.subr.bf16.mxu1 %v3014_v55 }
  0x9a   :  { %2834 = vmatpush3.bf16.msra.mxu1 %v3014_v55 }
  0x9b   :  { %2867 = vmatprep.subr.bf16.mxu1 %v3609_v56 }
  0x9c   :  { %497 = vmatmul.mubr.bf16.gmra.mrb[16].mxu0 %v2973_v40  ;;  %561 = vmatmul.mubr.bf16.gmra.mrb[16].mxu1 %v2997_v42 }
  0x9d   :  { %504 = vmatprep.mubr.bf16.mxu0 %v2974_v41  ;;  %568 = vmatprep.mubr.bf16.mxu1 %v2998_v43  ;;  %v3016_v43 = vld [vmem:[#allocation8 + $0x8] sm:$0xff]  }
  0xa4   :  { %505 = vmatmul.mubr.bf16.gmra.mrb[20].mxu0 %v2976_v44  ;;  %569 = vmatmul.mubr.bf16.gmra.mrb[20].mxu1 %v3000_v46 }
  0xa5   :  { %512 = vmatprep.mubr.bf16.mxu0 %v2977_v45  ;;  %576 = vmatprep.mubr.bf16.mxu1 %v3001_v47 }
  0xac   :  { %513 = vmatmul.mubr.bf16.gmra.mrb[24].mxu0 %v2979_v48  ;;  %577 = vmatmul.mubr.bf16.gmra.mrb[24].mxu1 %v3003_v50 }
  0xad   :  { %520 = vmatprep.mubr.bf16.mxu0 %v2983_v49  ;;  %584 = vmatprep.mubr.bf16.mxu1 %v3004_v51 }
  0xb4   :  { %521 = vmatmul.mubr.bf16.gmra.mrb[28].mxu0 %v2985_v52  ;;  %585 = vmatmul.mubr.bf16.gmra.mrb[28].mxu1 %v3006_v53 }
 0x14f   :  { %v2675_v57 = vpop.f32.mrb[0].mxu0  ;;  %v2723_v60 = vpop.f32.mrb[0].mxu1 }
 0x150   :  { %v2676_v59 = vpop.f32.mrb[1].mxu0  ;;  %v2724_v63 = vpop.f32.mrb[1].mxu1 }
 0x151   :  { %v2677_v61 = vadd.f32 %v2676_v59, %v2675_v57  ;;  %v2678_v62 = vpop.f32.mrb[2].mxu0  ;;  %v2725_v1 = vadd.f32 %v2724_v63, %v2723_v60  ;;  %v2726_v2 = vpop.f32.mrb[2].mxu1 }
 0x152   :  { %v2679_v0 = vpop.f32.mrb[3].mxu0  ;;  %v2727_v5 = vpop.f32.mrb[3].mxu1 }
 0x153   :  { %v467_v3 = vadd.f32 %v2677_v61, %v3615_v58  ;;  %v2680_v4 = vadd.f32 %v2679_v0, %v2678_v62  ;;  %v531_v6 = vadd.f32 %v2725_v1, %v3615_v58  ;;  %v2728_v7 = vadd.f32 %v2727_v5, %v2726_v2 }
 0x155   :  { %v470_v8 = vadd.f32 %v2680_v4, %v3615_v58  ;;  %v609_v9 = vmax.f32 %v531_v6, 0.0  ;;  %v534_v10 = vadd.f32 %v2728_v7, %v3615_v58  ;;  %v593_v11 = vmax.f32 %v467_v3, 0.0 }
 0x157   :  { %v594_v12 = vmax.f32 %v470_v8, 0.0  ;;  %v2681_v13 = vpop.f32.mrb[4].mxu0  ;;  %v610_v15 = vmax.f32 %v534_v10, 0.0  ;;  %v2729_v16 = vpop.f32.mrb[4].mxu1 }
 0x158   :  { %v2682_v14 = vpop.f32.mrb[5].mxu0  ;;  %v2730_v20 = vpop.f32.mrb[5].mxu1 }
 0x159   :  { %v2683_v17 = vadd.f32 %v2682_v14, %v2681_v13  ;;  %v2684_v18 = vpop.f32.mrb[6].mxu0  ;;  %v625_v19 = vpack.c.bf16 %v594_v12, %v593_v11  ;;  %v2731_v22 = vadd.f32 %v2730_v20, %v2729_v16  ;;  %v2732_v23 = vpop.f32.mrb[6].mxu1  ;;  %v3621_v24 = vpack.c.bf16 %v610_v15, %v609_v9  ;;  %v3019_v15 = vld [vmem:[#allocation8 + $0x20] sm:$0xff]  }
 0x15a   :  { %v2685_v21 = vpop.f32.mrb[7].mxu0  ;;  %v2733_v27 = vpop.f32.mrb[7].mxu1 }
 0x15b   :  { %v475_v25 = vadd.f32 %v2683_v17, %v3615_v58  ;;  %v2686_v26 = vadd.f32 %v2685_v21, %v2684_v18  ;;  %2835 = vmatprep.mubr.bf16.mxu1 %v625_v19  ;;  %v539_v28 = vadd.f32 %v2731_v22, %v3615_v58  ;;  %v2734_v29 = vadd.f32 %v2733_v27, %v2732_v23 }
 0x15d   :  { %v478_v30 = vadd.f32 %v2686_v26, %v3615_v58  ;;  %v611_v31 = vmax.f32 %v539_v28, 0.0  ;;  %v542_v32 = vadd.f32 %v2734_v29, %v3615_v58  ;;  %v595_v33 = vmax.f32 %v475_v25, 0.0  ;;  %v3020_v29 = vld [vmem:[#allocation8 + $0x28] sm:$0xff]  }
 0x15f   :  { %v596_v34 = vmax.f32 %v478_v30, 0.0  ;;  %v2687_v35 = vpop.f32.mrb[8].mxu0  ;;  %v612_v37 = vmax.f32 %v542_v32, 0.0  ;;  %v2735_v38 = vpop.f32.mrb[8].mxu1 }
 0x160   :  { %v2688_v36 = vpop.f32.mrb[9].mxu0  ;;  %v2736_v42 = vpop.f32.mrb[9].mxu1 }
 0x161   :  { %v626_v39 = vpack.c.bf16 %v596_v34, %v595_v33  ;;  %v2689_v40 = vadd.f32 %v2688_v36, %v2687_v35  ;;  %v2690_v41 = vpop.f32.mrb[10].mxu0  ;;  %v2737_v45 = vadd.f32 %v2736_v42, %v2735_v38  ;;  %v2738_v46 = vpop.f32.mrb[10].mxu1  ;;  %v3627_v47 = vpack.c.bf16 %v612_v37, %v611_v31 }
 0x162   :  { %v2691_v44 = vpop.f32.mrb[11].mxu0  ;;  %v2739_v50 = vpop.f32.mrb[11].mxu1 }
 0x163   :  { %v483_v48 = vadd.f32 %v2689_v40, %v3615_v58  ;;  %v2692_v49 = vadd.f32 %v2691_v44, %v2690_v41  ;;  %2836 = vmatmul.mubr.bf16.vlgmr.msra.gmra.mrb[32].mxu1 %v626_v39  ;;  %v547_v51 = vadd.f32 %v2737_v45, %v3615_v58  ;;  %v2740_v52 = vadd.f32 %v2739_v50, %v2738_v46  ;;  %v3021_v40 = vld [vmem:[#allocation8 + $0x30] sm:$0xff]  }
 0x164   :  { %2868 = vmatpush3.bf16.msra.mxu1 %v3609_v56  ;;  %v3018_v56 = vld [vmem:[#allocation8 + $0x18] sm:$0xff]  }
 0x165   :  { %v486_v53 = vadd.f32 %v2692_v49, %v3615_v58  ;;  %2869 = vmatprep.subr.bf16.mxu1 %v3016_v43  ;;  %v613_v55 = vmax.f32 %v547_v51, 0.0  ;;  %v550_v57 = vadd.f32 %v2740_v52, %v3615_v58  ;;  %v597_v59 = vmax.f32 %v483_v48, 0.0 }
 0x167   :  { %v598_v60 = vmax.f32 %v486_v53, 0.0  ;;  %v2693_v61 = vpop.f32.mrb[12].mxu0  ;;  %v614_v63 = vmax.f32 %v550_v57, 0.0  ;;  %v2741_v0 = vpop.f32.mrb[12].mxu1 }
 0x168   :  { %v2694_v62 = vpop.f32.mrb[13].mxu0  ;;  %2870 = vmatpush3.bf16.msra.mxu1 %v3016_v43  ;;  %v2742_v4 = vpop.f32.mrb[13].mxu1 }
 0x169   :  { %v2695_v1 = vadd.f32 %v2694_v62, %v2693_v61  ;;  %v2696_v2 = vpop.f32.mrb[14].mxu0  ;;  %v627_v3 = vpack.c.bf16 %v598_v60, %v597_v59  ;;  %2871 = vmatprep.subr.bf16.mxu1 %v3017_v54  ;;  %v2743_v6 = vadd.f32 %v2742_v4, %v2741_v0  ;;  %v2744_v7 = vpop.f32.mrb[14].mxu1  ;;  %v3634_v8 = vpack.c.bf16 %v614_v63, %v613_v55 }
 0x16a   :  { %v2697_v5 = vpop.f32.mrb[15].mxu0  ;;  %v2745_v11 = vpop.f32.mrb[15].mxu1 }
 0x16b   :  { %v491_v9 = vadd.f32 %v2695_v1, %v3615_v58  ;;  %v2698_v10 = vadd.f32 %v2697_v5, %v2696_v2  ;;  %2839 = vmatprep.mubr.bf16.mxu1 %v627_v3  ;;  %v555_v12 = vadd.f32 %v2743_v6, %v3615_v58  ;;  %v2746_v13 = vadd.f32 %v2745_v11, %v2744_v7 }
 0x16c   :  { %2872 = vmatpush3.bf16.msra.mxu1 %v3017_v54 }
 0x16d   :  { %v494_v14 = vadd.f32 %v2698_v10, %v3615_v58  ;;  %2873 = vmatprep.subr.bf16.mxu1 %v3018_v56  ;;  %v615_v16 = vmax.f32 %v555_v12, 0.0  ;;  %v558_v17 = vadd.f32 %v2746_v13, %v3615_v58  ;;  %v599_v18 = vmax.f32 %v491_v9, 0.0 }
 0x16f   :  { %v600_v19 = vmax.f32 %v494_v14, 0.0  ;;  %v2699_v20 = vpop.f32.mrb[16].mxu0  ;;  %v616_v22 = vmax.f32 %v558_v17, 0.0  ;;  %v2747_v23 = vpop.f32.mrb[16].mxu1 }
 0x170   :  { %v2700_v21 = vpop.f32.mrb[17].mxu0  ;;  %2874 = vmatpush3.bf16.msra.mxu1 %v3018_v56  ;;  %v2748_v28 = vpop.f32.mrb[17].mxu1 }
 0x171   :  { %v2701_v25 = vadd.f32 %v2700_v21, %v2699_v20  ;;  %v2702_v26 = vpop.f32.mrb[18].mxu0  ;;  %v628_v27 = vpack.c.bf16 %v600_v19, %v599_v18  ;;  %2875 = vmatprep.subr.bf16.mxu1 %v3019_v15  ;;  %v3640_v31 = vpack.c.bf16 %v616_v22, %v615_v16  ;;  %v2749_v32 = vadd.f32 %v2748_v28, %v2747_v23  ;;  %v2750_v33 = vpop.f32.mrb[18].mxu1 }
 0x172   :  { %v2703_v30 = vpop.f32.mrb[19].mxu0  ;;  %v2751_v36 = vpop.f32.mrb[19].mxu1 }
 0x173   :  { %v499_v34 = vadd.f32 %v2701_v25, %v3615_v58  ;;  %v2704_v35 = vadd.f32 %v2703_v30, %v2702_v26  ;;  %2840 = vmatmul.mubr.bf16.gmra.mrb[36].mxu1 %v628_v27  ;;  %v563_v37 = vadd.f32 %v2749_v32, %v3615_v58  ;;  %v2752_v38 = vadd.f32 %v2751_v36, %v2750_v33 }
 0x174   :  { %2876 = vmatpush3.bf16.msra.mxu1 %v3019_v15 }
 0x175   :  { %v502_v39 = vadd.f32 %v2704_v35, %v3615_v58  ;;  %2877 = vmatprep.subr.bf16.mxu1 %v3020_v29  ;;  %v617_v41 = vmax.f32 %v563_v37, 0.0  ;;  %v566_v42 = vadd.f32 %v2752_v38, %v3615_v58  ;;  %v601_v43 = vmax.f32 %v499_v34, 0.0 }
 0x177   :  { %v602_v44 = vmax.f32 %v502_v39, 0.0  ;;  %v2705_v45 = vpop.f32.mrb[20].mxu0  ;;  %v618_v48 = vmax.f32 %v566_v42, 0.0  ;;  %v2753_v49 = vpop.f32.mrb[20].mxu1 }
 0x178   :  { %v2706_v46 = vpop.f32.mrb[21].mxu0  ;;  %2878 = vmatpush3.bf16.msra.mxu1 %v3020_v29  ;;  %v2754_v53 = vpop.f32.mrb[21].mxu1 }
 0x179   :  { %v2707_v50 = vadd.f32 %v2706_v46, %v2705_v45  ;;  %v2708_v51 = vpop.f32.mrb[22].mxu0  ;;  %v629_v52 = vpack.c.bf16 %v602_v44, %v601_v43  ;;  %2879 = vmatprep.subr.bf16.mxu1 %v3021_v40  ;;  %v2755_v55 = vadd.f32 %v2754_v53, %v2753_v49  ;;  %v2756_v57 = vpop.f32.mrb[22].mxu1  ;;  %v3646_v59 = vpack.c.bf16 %v618_v48, %v617_v41 }
 0x17a   :  { %v2709_v54 = vpop.f32.mrb[23].mxu0  ;;  %v2757_v62 = vpop.f32.mrb[23].mxu1 }
 0x17b   :  { %v507_v60 = vadd.f32 %v2707_v50, %v3615_v58  ;;  %v2710_v61 = vadd.f32 %v2709_v54, %v2708_v51  ;;  %2843 = vmatprep.mubr.bf16.mxu1 %v629_v52  ;;  %v571_v63 = vadd.f32 %v2755_v55, %v3615_v58  ;;  %v2758_v0 = vadd.f32 %v2757_v62, %v2756_v57  ;;  %v3023_v57 = vld [vmem:[#allocation10] ss:$8 sps:$4 sm:$0xff]   ;;  %v3037_v62 = vld [vmem:[#allocation10 + $0x44] ss:$8 sps:$4 sm:$0xff]  }
 0x17c   :  { %2880 = vmatpush3.bf16.msra.mxu1 %v3021_v40 }
 0x17d   :  { %v510_v1 = vadd.f32 %v2710_v61, %v3615_v58  ;;  %v619_v2 = vmax.f32 %v571_v63, 0.0  ;;  %v574_v3 = vadd.f32 %v2758_v0, %v3615_v58  ;;  %v603_v4 = vmax.f32 %v507_v60, 0.0  ;;  %v3025_v60 = vld [vmem:[#allocation10 + $0x4] ss:$8 sps:$4 sm:$0xff]   ;;  %v3028_v61 = vld [vmem:[#allocation10 + $0x14] ss:$8 sps:$4 sm:$0xff]  }
 0x17e   :  { %1453 = vmatprep.subr.bf16.mxu0 %v3025_v60  ;;  %v3035_v63 = vld [vmem:[#allocation10 + $0x40] ss:$8 sps:$4 sm:$0xff]   ;;  %v3040_v0 = vld [vmem:[#allocation10 + $0x54] ss:$8 sps:$4 sm:$0xff]  }
 0x17f   :  { %v604_v56 = vmax.f32 %v510_v1, 0.0  ;;  %v2711_v5 = vpop.f32.mrb[24].mxu0  ;;  %v620_v7 = vmax.f32 %v574_v3, 0.0  ;;  %v2759_v9 = vpop.f32.mrb[24].mxu1  ;;  %1454 = vmatpush1.bf16.msra.mxu0 %v3023_v57  ;;  %v3038_v1 = vld [vmem:[#allocation10 + $0x50] ss:$8 sps:$4 sm:$0xff]  }
 0x180   :  { %v2712_v6 = vpop.f32.mrb[25].mxu0  ;;  %v2760_v13 = vpop.f32.mrb[25].mxu1  ;;  %1455 = vmatprep.subr.bf16.mxu0 %v3028_v61  ;;  %v3041_v3 = vld [vmem:[#allocation10 + $0x60] ss:$8 sps:$4 sm:$0xff]  }
 0x181   :  { %v2713_v10 = vadd.f32 %v2712_v6, %v2711_v5  ;;  %v2714_v11 = vpop.f32.mrb[26].mxu0  ;;  %v630_v12 = vpack.c.bf16 %v604_v56, %v603_v4  ;;  %v638_v15 = vpack.c.bf16 %v620_v7, %v619_v2  ;;  %v2761_v16 = vadd.f32 %v2760_v13, %v2759_v9  ;;  %v2762_v17 = vpop.f32.mrb[26].mxu1  ;;  %v3043_v2 = vld [vmem:[#allocation10 + $0x64] ss:$8 sps:$4 sm:$0xff]   ;;  %v3668_v4 = vld [vmem:[%s3862_s6] ss:$0 sm:$0xff] }
 0x182   :  { %v2715_v14 = vpop.f32.mrb[27].mxu0  ;;  %v2763_v20 = vpop.f32.mrb[27].mxu1 }
 0x183   :  { %v515_v18 = vadd.f32 %v2713_v10, %v3615_v58  ;;  %v2716_v19 = vadd.f32 %v2715_v14, %v2714_v11  ;;  %2844 = vmatmul.mubr.bf16.gmra.mrb[40].mxu1 %v630_v12  ;;  %v579_v21 = vadd.f32 %v2761_v16, %v3615_v58  ;;  %v2764_v22 = vadd.f32 %v2763_v20, %v2762_v17 }
 0x185   :  { %v518_v23 = vadd.f32 %v2716_v19, %v3615_v58  ;;  %v621_v25 = vmax.f32 %v579_v21, 0.0  ;;  %v582_v26 = vadd.f32 %v2764_v22, %v3615_v58  ;;  %v605_v27 = vmax.f32 %v515_v18, 0.0 }
 0x187   :  { %v606_v28 = vmax.f32 %v518_v23, 0.0  ;;  %v2717_v29 = vpop.f32.mrb[28].mxu0  ;;  %v622_v32 = vmax.f32 %v582_v26, 0.0  ;;  %v2765_v33 = vpop.f32.mrb[28].mxu1 }
 0x188   :  { %v2718_v30 = vpop.f32.mrb[29].mxu0  ;;  %v2766_v37 = vpop.f32.mrb[29].mxu1 }
 0x189   :  { %v2719_v34 = vadd.f32 %v2718_v30, %v2717_v29  ;;  %v2720_v35 = vpop.f32.mrb[30].mxu0  ;;  %v631_v36 = vpack.c.bf16 %v606_v28, %v605_v27  ;;  %v2767_v39 = vadd.f32 %v2766_v37, %v2765_v33  ;;  %v2768_v40 = vpop.f32.mrb[30].mxu1  ;;  %v639_v41 = vpack.c.bf16 %v622_v32, %v621_v25 }
 0x18a   :  { %v2721_v38 = vpop.f32.mrb[31].mxu0  ;;  %v2769_v44 = vpop.f32.mrb[31].mxu1 }
 0x18b   :  { %v523_v42 = vadd.f32 %v2719_v34, %v3615_v58  ;;  %v2722_v43 = vadd.f32 %v2721_v38, %v2720_v35  ;;  %2847 = vmatprep.mubr.bf16.mxu1 %v631_v36  ;;  %v587_v45 = vadd.f32 %v2767_v39, %v3615_v58  ;;  %v2770_v46 = vadd.f32 %v2769_v44, %v2768_v40 }
 0x18d   :  { %v526_v48 = vadd.f32 %v2722_v43, %v3615_v58  ;;  %v623_v49 = vmax.f32 %v587_v45, 0.0  ;;  %v590_v50 = vadd.f32 %v2770_v46, %v3615_v58  ;;  %v607_v51 = vmax.f32 %v523_v42, 0.0  ;;  %v3022_v58 = vld [vmem:[#allocation8 + $0x38] sm:$0xff]  }
 0x18e   :  { %2881 = vmatprep.subr.bf16.mxu1 %v3022_v58 }
 0x18f   :  { %v608_v52 = vmax.f32 %v526_v48, 0.0  ;;  %v624_v53 = vmax.f32 %v590_v50, 0.0  ;;  %2882 = vmatpush3.bf16.msra.mxu1 %v3022_v58 }
 0x191   :  { %v632_v54 = vpack.c.bf16 %v608_v52, %v607_v51  ;;  %v640_v55 = vpack.c.bf16 %v624_v53, %v623_v49 }
 0x193   :  { %2848 = vmatmul.mubr.bf16.gmra.mrb[44].mxu1 %v632_v54 }
 0x194   :  { %2851 = vmatprep.mubr.bf16.mxu1 %v3621_v24  ;;  %v3026_v24 = vld [vmem:[#allocation10 + $0x10] ss:$8 sps:$4 sm:$0xff]  }
 0x195   :  { %1456 = vmatpush1.bf16.msra.mxu0 %v3026_v24 }
 0x19b   :  { %2852 = vmatmul.mubr.bf16.gmra.mrb[48].mxu1 %v3627_v47  ;;  %v3031_v47 = vld [vmem:[#allocation10 + $0x24] ss:$8 sps:$4 sm:$0xff]  }
 0x19c   :  { %2855 = vmatprep.mubr.bf16.mxu1 %v3634_v8  ;;  %v3029_v8 = vld [vmem:[#allocation10 + $0x20] ss:$8 sps:$4 sm:$0xff]   ;;  %1457 = vmatprep.subr.bf16.mxu0 %v3031_v47 }
 0x19d   :  { %1458 = vmatpush1.bf16.msra.mxu0 %v3029_v8 }
 0x1a3   :  { %2856 = vmatmul.mubr.bf16.gmra.mrb[52].mxu1 %v3640_v31  ;;  %v3034_v31 = vld [vmem:[#allocation10 + $0x34] ss:$8 sps:$4 sm:$0xff]  }
 0x1a4   :  { %2859 = vmatprep.mubr.bf16.mxu1 %v3646_v59  ;;  %v3032_v59 = vld [vmem:[#allocation10 + $0x30] ss:$8 sps:$4 sm:$0xff]   ;;  %1459 = vmatprep.subr.bf16.mxu0 %v3034_v31 }
 0x1a5   :  { %1460 = vmatpush1.bf16.msra.mxu0 %v3032_v59 }
 0x1a6   :  { %1461 = vmatprep.subr.bf16.mxu0 %v3037_v62 }
 0x1a9   :  { %1462 = vmatpush1.bf16.msra.mxu0 %v3035_v63 }
 0x1aa   :  { %1463 = vmatprep.subr.bf16.mxu0 %v3040_v0 }
 0x1ab   :  { %2860 = vmatmul.mubr.bf16.gmra.mrb[56].mxu1 %v638_v15 }
 0x1ac   :  { %2863 = vmatprep.mubr.bf16.mxu1 %v639_v41 }
 0x1ad   :  { %1464 = vmatpush1.bf16.msra.mxu0 %v3038_v1 }
 0x1ae   :  { %1465 = vmatprep.subr.bf16.mxu0 %v3043_v2 }
 0x1b1   :  { %1466 = vmatpush1.bf16.msra.mxu0 %v3041_v3 }
 0x1b3   :  { %2864 = vmatmul.mubr.bf16.gmra.mrb[60].mxu1 %v640_v55 }
 0x236   :  { %v2837_v56 = vpop.f32.mrb[32].mxu1 }
 0x237   :  { %v755_v5 = vadd.f32 %v2837_v56, %v3668_v4  ;;  %v746_v6 = vpop.f32.mrb[33].mxu1 }
 0x238   :  { %v747_v7 = vadd.f32 %v3668_v4, %v746_v6  ;;  %v2838_v9 = vpop.f32.mrb[34].mxu1 }
 0x239   :  { %v758_v10 = vadd.f32 %v2838_v9, %v3668_v4  ;;  %v749_v11 = vpop.f32.mrb[35].mxu1  ;;  %v875_v13 = vmax.f32 %v755_v5, 0.0 }
 0x23a   :  { %v750_v12 = vadd.f32 %v3668_v4, %v749_v11  ;;  %v873_v15 = vmax.f32 %v747_v7, 0.0 }
 0x23b   :  { %v876_v14 = vmax.f32 %v758_v10, 0.0 }
 0x23c   :  { %v874_v16 = vmax.f32 %v750_v12, 0.0 }
 0x23d   :  { %v906_v17 = vpack.c.bf16 %v876_v14, %v875_v13 }
 0x23e   :  { %v905_v18 = vpack.c.bf16 %v874_v16, %v873_v15 }
 0x23f   :  { %2644 = vst [vmem:[#allocation11 + $0x8] sm:$0xff] %v906_v17  }
 0x240   :  { %2568 = vst [vmem:[#allocation11] sm:$0xff] %v905_v18   ;;  %2883 = vmatprep.mubr.bf16.mxu1 %v905_v18 }
 0x241   :  { %2884 = vmatmul.mubr.bf16.vlgmr.msra.gmra.mrb[64].mxu1 %v906_v17 }
 0x246   :  { %v2841_v19 = vpop.f32.mrb[36].mxu1 }
 0x247   :  { %v771_v20 = vadd.f32 %v2841_v19, %v3668_v4  ;;  %v762_v21 = vpop.f32.mrb[37].mxu1 }
 0x248   :  { %v763_v22 = vadd.f32 %v3668_v4, %v762_v21  ;;  %v2842_v23 = vpop.f32.mrb[38].mxu1 }
 0x249   :  { %v774_v25 = vadd.f32 %v2842_v23, %v3668_v4  ;;  %v765_v26 = vpop.f32.mrb[39].mxu1  ;;  %v879_v28 = vmax.f32 %v771_v20, 0.0 }
 0x24a   :  { %v766_v27 = vadd.f32 %v3668_v4, %v765_v26  ;;  %v877_v30 = vmax.f32 %v763_v22, 0.0 }
 0x24b   :  { %v880_v29 = vmax.f32 %v774_v25, 0.0 }
 0x24c   :  { %v878_v32 = vmax.f32 %v766_v27, 0.0 }
 0x24d   :  { %v908_v33 = vpack.c.bf16 %v880_v29, %v879_v28 }
 0x24e   :  { %v907_v34 = vpack.c.bf16 %v878_v32, %v877_v30 }
 0x24f   :  { %2646 = vst [vmem:[#allocation11 + $0x18] sm:$0xff] %v908_v33  }
 0x250   :  { %2645 = vst [vmem:[#allocation11 + $0x10] sm:$0xff] %v907_v34   ;;  %2887 = vmatprep.mubr.bf16.mxu1 %v907_v34 }
 0x251   :  { %2888 = vmatmul.mubr.bf16.gmra.mrb[68].mxu1 %v908_v33 }
 0x256   :  { %v2845_v35 = vpop.f32.mrb[40].mxu1 }
 0x257   :  { %v787_v36 = vadd.f32 %v2845_v35, %v3668_v4  ;;  %v778_v37 = vpop.f32.mrb[41].mxu1 }
 0x258   :  { %v779_v38 = vadd.f32 %v3668_v4, %v778_v37  ;;  %v2846_v39 = vpop.f32.mrb[42].mxu1 }
 0x259   :  { %v790_v40 = vadd.f32 %v2846_v39, %v3668_v4  ;;  %v781_v41 = vpop.f32.mrb[43].mxu1  ;;  %v883_v43 = vmax.f32 %v787_v36, 0.0 }
 0x25a   :  { %v782_v42 = vadd.f32 %v3668_v4, %v781_v41  ;;  %v881_v45 = vmax.f32 %v779_v38, 0.0 }
 0x25b   :  { %v884_v44 = vmax.f32 %v790_v40, 0.0 }
 0x25c   :  { %v882_v46 = vmax.f32 %v782_v42, 0.0 }
 0x25d   :  { %v910_v48 = vpack.c.bf16 %v884_v44, %v883_v43 }
 0x25e   :  { %v909_v49 = vpack.c.bf16 %v882_v46, %v881_v45 }
 0x25f   :  { %2648 = vst [vmem:[#allocation11 + $0x28] sm:$0xff] %v910_v48  }
 0x260   :  { %2647 = vst [vmem:[#allocation11 + $0x20] sm:$0xff] %v909_v49   ;;  %2891 = vmatprep.mubr.bf16.mxu1 %v909_v49 }
 0x261   :  { %2892 = vmatmul.mubr.bf16.gmra.mrb[72].mxu1 %v910_v48 }
 0x266   :  { %v2849_v50 = vpop.f32.mrb[44].mxu1 }
 0x267   :  { %v803_v51 = vadd.f32 %v2849_v50, %v3668_v4  ;;  %v794_v52 = vpop.f32.mrb[45].mxu1 }
 0x268   :  { %v795_v53 = vadd.f32 %v3668_v4, %v794_v52  ;;  %v2850_v54 = vpop.f32.mrb[46].mxu1 }
 0x269   :  { %v806_v55 = vadd.f32 %v2850_v54, %v3668_v4  ;;  %v797_v58 = vpop.f32.mrb[47].mxu1  ;;  %v887_v60 = vmax.f32 %v803_v51, 0.0 }
 0x26a   :  { %v798_v57 = vadd.f32 %v3668_v4, %v797_v58  ;;  %v885_v24 = vmax.f32 %v795_v53, 0.0 }
 0x26b   :  { %v888_v61 = vmax.f32 %v806_v55, 0.0 }
 0x26c   :  { %v886_v47 = vmax.f32 %v798_v57, 0.0  ;;  %v3044_v57 = vld [vmem:[#allocation10 + $0x70] ss:$8 sps:$4 sm:$0xff]  }
 0x26d   :  { %v912_v8 = vpack.c.bf16 %v888_v61, %v887_v60  ;;  %v3046_v60 = vld [vmem:[#allocation10 + $0x74] ss:$8 sps:$4 sm:$0xff]   ;;  %v3476_v61 = vmov 0  }
 0x26e   :  { %v911_v31 = vpack.c.bf16 %v886_v47, %v885_v24  ;;  %v2853_v59 = vpop.f32.mrb[48].mxu1  ;;  %1467 = vmatprep.subr.bf16.mxu0 %v3046_v60  ;;  %1485 = vmatprep.mubr.bf16.mxu0 %v3476_v61  ;;  %v3706_v24 = vld [vmem:[%s3863_s7] ss:$0 sm:$0xff] }
 0x26f   :  { %2650 = vst [vmem:[#allocation11 + $0x38] sm:$0xff] %v912_v8   ;;  %v819_v62 = vadd.f32 %v2853_v59, %v3668_v4  ;;  %v810_v63 = vpop.f32.mrb[49].mxu1  ;;  %1468 = vmatpush1.bf16.msra.mxu0 %v3044_v57 }
 0x270   :  { %2649 = vst [vmem:[#allocation11 + $0x30] sm:$0xff] %v911_v31   ;;  %v811_v0 = vadd.f32 %v3668_v4, %v810_v63  ;;  %v2854_v1 = vpop.f32.mrb[50].mxu1  ;;  %2895 = vmatprep.mubr.bf16.mxu1 %v911_v31 }
 0x271   :  { %v891_v2 = vmax.f32 %v819_v62, 0.0  ;;  %v822_v3 = vadd.f32 %v2854_v1, %v3668_v4  ;;  %v813_v56 = vpop.f32.mrb[51].mxu1  ;;  %2896 = vmatmul.mubr.bf16.gmra.mrb[76].mxu1 %v912_v8 }
 0x272   :  { %v889_v5 = vmax.f32 %v811_v0, 0.0  ;;  %v814_v6 = vadd.f32 %v3668_v4, %v813_v56 }
 0x273   :  { %v892_v7 = vmax.f32 %v822_v3, 0.0 }
 0x274   :  { %v890_v9 = vmax.f32 %v814_v6, 0.0 }
 0x275   :  { %v914_v10 = vpack.c.bf16 %v892_v7, %v891_v2 }
 0x276   :  { %v913_v11 = vpack.c.bf16 %v890_v9, %v889_v5  ;;  %v2857_v12 = vpop.f32.mrb[52].mxu1 }
 0x277   :  { %2652 = vst [vmem:[#allocation11 + $0x48] sm:$0xff] %v914_v10   ;;  %v835_v13 = vadd.f32 %v2857_v12, %v3668_v4  ;;  %v826_v14 = vpop.f32.mrb[53].mxu1 }
 0x278   :  { %2651 = vst [vmem:[#allocation11 + $0x40] sm:$0xff] %v913_v11   ;;  %2899 = vmatprep.mubr.bf16.mxu1 %v913_v11  ;;  %v827_v15 = vadd.f32 %v3668_v4, %v826_v14  ;;  %v2858_v16 = vpop.f32.mrb[54].mxu1 }
 0x279   :  { %2900 = vmatmul.mubr.bf16.gmra.mrb[80].mxu1 %v914_v10  ;;  %v895_v17 = vmax.f32 %v835_v13, 0.0  ;;  %v838_v18 = vadd.f32 %v2858_v16, %v3668_v4  ;;  %v829_v19 = vpop.f32.mrb[55].mxu1 }
 0x27a   :  { %v893_v20 = vmax.f32 %v827_v15, 0.0  ;;  %v830_v21 = vadd.f32 %v3668_v4, %v829_v19 }
 0x27b   :  { %v896_v22 = vmax.f32 %v838_v18, 0.0 }
 0x27c   :  { %v894_v23 = vmax.f32 %v830_v21, 0.0 }
 0x27d   :  { %v916_v25 = vpack.c.bf16 %v896_v22, %v895_v17 }
 0x27e   :  { %v915_v26 = vpack.c.bf16 %v894_v23, %v893_v20  ;;  %v2861_v27 = vpop.f32.mrb[56].mxu1 }
 0x27f   :  { %2654 = vst [vmem:[#allocation11 + $0x58] sm:$0xff] %v916_v25   ;;  %v851_v28 = vadd.f32 %v2861_v27, %v3668_v4  ;;  %v842_v29 = vpop.f32.mrb[57].mxu1 }
 0x280   :  { %2653 = vst [vmem:[#allocation11 + $0x50] sm:$0xff] %v915_v26   ;;  %2903 = vmatprep.mubr.bf16.mxu1 %v915_v26  ;;  %v843_v30 = vadd.f32 %v3668_v4, %v842_v29  ;;  %v2862_v32 = vpop.f32.mrb[58].mxu1 }
 0x281   :  { %2904 = vmatmul.mubr.bf16.gmra.mrb[84].mxu1 %v916_v25  ;;  %v899_v33 = vmax.f32 %v851_v28, 0.0  ;;  %v854_v34 = vadd.f32 %v2862_v32, %v3668_v4  ;;  %v845_v35 = vpop.f32.mrb[59].mxu1 }
 0x282   :  { %v897_v36 = vmax.f32 %v843_v30, 0.0  ;;  %v846_v37 = vadd.f32 %v3668_v4, %v845_v35 }
 0x283   :  { %v900_v38 = vmax.f32 %v854_v34, 0.0 }
 0x284   :  { %v898_v39 = vmax.f32 %v846_v37, 0.0 }
 0x285   :  { %v918_v40 = vpack.c.bf16 %v900_v38, %v899_v33 }
 0x286   :  { %v917_v41 = vpack.c.bf16 %v898_v39, %v897_v36  ;;  %v2865_v42 = vpop.f32.mrb[60].mxu1 }
 0x287   :  { %2656 = vst [vmem:[#allocation11 + $0x68] sm:$0xff] %v918_v40   ;;  %v867_v43 = vadd.f32 %v2865_v42, %v3668_v4  ;;  %v858_v44 = vpop.f32.mrb[61].mxu1 }
 0x288   :  { %2655 = vst [vmem:[#allocation11 + $0x60] sm:$0xff] %v917_v41   ;;  %2907 = vmatprep.mubr.bf16.mxu1 %v917_v41  ;;  %v859_v45 = vadd.f32 %v3668_v4, %v858_v44  ;;  %v2866_v46 = vpop.f32.mrb[62].mxu1 }
 0x289   :  { %2908 = vmatmul.mubr.bf16.gmra.mrb[88].mxu1 %v918_v40  ;;  %v903_v48 = vmax.f32 %v867_v43, 0.0  ;;  %v870_v49 = vadd.f32 %v2866_v46, %v3668_v4  ;;  %v861_v50 = vpop.f32.mrb[63].mxu1 }
 0x28a   :  { %v901_v51 = vmax.f32 %v859_v45, 0.0  ;;  %v862_v52 = vadd.f32 %v3668_v4, %v861_v50 }
 0x28b   :  { %v904_v53 = vmax.f32 %v870_v49, 0.0 }
 0x28c   :  { %v902_v54 = vmax.f32 %v862_v52, 0.0 }
 0x28d   :  { %v920_v55 = vpack.c.bf16 %v904_v53, %v903_v48 }
 0x28e   :  { %v919_v58 = vpack.c.bf16 %v902_v54, %v901_v51 }
 0x28f   :  { %2658 = vst [vmem:[#allocation11 + $0x78] sm:$0xff] %v920_v55  }
 0x290   :  { %2657 = vst [vmem:[#allocation11 + $0x70] sm:$0xff] %v919_v58   ;;  %2911 = vmatprep.mubr.bf16.mxu1 %v919_v58 }
 0x291   :  { %2912 = vmatmul.mubr.bf16.gmra.mrb[92].mxu1 %v920_v55 }
 0x314   :  { %v2885_v4 = vpop.f32.mrb[64].mxu1 }
 0x315   :  { %v1179_v47 = vadd.f32 %v2885_v4, %v3706_v24  ;;  %v1170_v8 = vpop.f32.mrb[65].mxu1 }
 0x316   :  { %v1171_v31 = vadd.f32 %v3706_v24, %v1170_v8  ;;  %v2886_v59 = vpop.f32.mrb[66].mxu1 }
 0x317   :  { %v1182_v62 = vadd.f32 %v2886_v59, %v3706_v24  ;;  %v1173_v63 = vpop.f32.mrb[67].mxu1  ;;  %v1299_v1 = vmax.f32 %v1179_v47, 0.0 }
 0x318   :  { %v1174_v0 = vadd.f32 %v3706_v24, %v1173_v63  ;;  %v1297_v3 = vmax.f32 %v1171_v31, 0.0 }
 0x319   :  { %v1300_v2 = vmax.f32 %v1182_v62, 0.0 }
 0x31a   :  { %v1298_v56 = vmax.f32 %v1174_v0, 0.0 }
 0x31b   :  { %v1330_v5 = vpack.c.bf16 %v1300_v2, %v1299_v1 }
 0x31c   :  { %v1329_v6 = vpack.c.bf16 %v1298_v56, %v1297_v3 }
 0x31e   :  { %1486 = vmatmul.mubr.bf16.vlgmr.msra.gmra.mrb[32].mxu0 %v1329_v6 }
 0x31f   :  { %1495 = vmatprep.mubr.bf16.mxu0 %v3476_v61 }
 0x324   :  { %v2889_v7 = vpop.f32.mrb[68].mxu1 }
 0x325   :  { %v1195_v9 = vadd.f32 %v2889_v7, %v3706_v24  ;;  %v1186_v10 = vpop.f32.mrb[69].mxu1 }
 0x326   :  { %v1187_v11 = vadd.f32 %v3706_v24, %v1186_v10  ;;  %v2890_v12 = vpop.f32.mrb[70].mxu1  ;;  %1496 = vmatmul.mubr.bf16.gmra.mrb[36].mxu0 %v1330_v5 }
 0x327   :  { %v1198_v13 = vadd.f32 %v2890_v12, %v3706_v24  ;;  %v1189_v14 = vpop.f32.mrb[71].mxu1  ;;  %1505 = vmatprep.mubr.bf16.mxu0 %v3476_v61  ;;  %v1303_v16 = vmax.f32 %v1195_v9, 0.0 }
 0x328   :  { %v1190_v15 = vadd.f32 %v3706_v24, %v1189_v14  ;;  %v1301_v18 = vmax.f32 %v1187_v11, 0.0 }
 0x329   :  { %v1304_v17 = vmax.f32 %v1198_v13, 0.0 }
 0x32a   :  { %v1302_v19 = vmax.f32 %v1190_v15, 0.0 }
 0x32b   :  { %v1332_v20 = vpack.c.bf16 %v1304_v17, %v1303_v16 }
 0x32c   :  { %v1331_v21 = vpack.c.bf16 %v1302_v19, %v1301_v18 }
 0x32e   :  { %1506 = vmatmul.mubr.bf16.gmra.mrb[40].mxu0 %v1331_v21 }
 0x32f   :  { %1515 = vmatprep.mubr.bf16.mxu0 %v3476_v61 }
 0x334   :  { %v2893_v22 = vpop.f32.mrb[72].mxu1 }
 0x335   :  { %v1211_v23 = vadd.f32 %v2893_v22, %v3706_v24  ;;  %v1202_v25 = vpop.f32.mrb[73].mxu1 }
 0x336   :  { %v1203_v26 = vadd.f32 %v3706_v24, %v1202_v25  ;;  %v2894_v27 = vpop.f32.mrb[74].mxu1  ;;  %1516 = vmatmul.mubr.bf16.gmra.mrb[44].mxu0 %v1332_v20 }
 0x337   :  { %v1214_v28 = vadd.f32 %v2894_v27, %v3706_v24  ;;  %v1205_v29 = vpop.f32.mrb[75].mxu1  ;;  %1525 = vmatprep.mubr.bf16.mxu0 %v3476_v61  ;;  %v1307_v32 = vmax.f32 %v1211_v23, 0.0 }
 0x338   :  { %v1206_v30 = vadd.f32 %v3706_v24, %v1205_v29  ;;  %v1305_v34 = vmax.f32 %v1203_v26, 0.0 }
 0x339   :  { %v1308_v33 = vmax.f32 %v1214_v28, 0.0 }
 0x33a   :  { %v1306_v35 = vmax.f32 %v1206_v30, 0.0 }
 0x33b   :  { %v1334_v36 = vpack.c.bf16 %v1308_v33, %v1307_v32 }
 0x33c   :  { %v1333_v37 = vpack.c.bf16 %v1306_v35, %v1305_v34 }
 0x33e   :  { %1526 = vmatmul.mubr.bf16.gmra.mrb[48].mxu0 %v1333_v37 }
 0x33f   :  { %1535 = vmatprep.mubr.bf16.mxu0 %v3476_v61 }
 0x344   :  { %v2897_v38 = vpop.f32.mrb[76].mxu1 }
 0x345   :  { %v1227_v39 = vadd.f32 %v2897_v38, %v3706_v24  ;;  %v1218_v40 = vpop.f32.mrb[77].mxu1 }
 0x346   :  { %v1219_v41 = vadd.f32 %v3706_v24, %v1218_v40  ;;  %v2898_v42 = vpop.f32.mrb[78].mxu1  ;;  %1536 = vmatmul.mubr.bf16.gmra.mrb[52].mxu0 %v1334_v36 }
 0x347   :  { %v1230_v43 = vadd.f32 %v2898_v42, %v3706_v24  ;;  %v1221_v44 = vpop.f32.mrb[79].mxu1  ;;  %1545 = vmatprep.mubr.bf16.mxu0 %v3476_v61  ;;  %v1311_v46 = vmax.f32 %v1227_v39, 0.0 }
 0x348   :  { %v1222_v45 = vadd.f32 %v3706_v24, %v1221_v44  ;;  %v1309_v49 = vmax.f32 %v1219_v41, 0.0 }
 0x349   :  { %v1312_v48 = vmax.f32 %v1230_v43, 0.0 }
 0x34a   :  { %v1310_v50 = vmax.f32 %v1222_v45, 0.0 }
 0x34b   :  { %v1336_v51 = vpack.c.bf16 %v1312_v48, %v1311_v46 }
 0x34c   :  { %v1335_v52 = vpack.c.bf16 %v1310_v50, %v1309_v49  ;;  %v2901_v53 = vpop.f32.mrb[80].mxu1  ;;  %v1361_v49 = vld [vmem:[%s3864_s8] sm:$0x3]  ;;  %s3477_s8 = smov [#allocation11]  }
 0x34d   :  { %v1243_v54 = vadd.f32 %v2901_v53, %v3706_v24  ;;  %v1234_v55 = vpop.f32.mrb[81].mxu1  ;;  %s2259_s21 = sshll.u32 %s3477_s8, 4  ;;  %s2260_s21 = int_to_ptr.vmem [resolvable:$true] %s2259_s21 }
 0x34e   :  { %v1235_v58 = vadd.f32 %v3706_v24, %v1234_v55  ;;  %v2902_v57 = vpop.f32.mrb[82].mxu1  ;;  %1546 = vmatmul.mubr.bf16.gmra.mrb[56].mxu0 %v1335_v52  ;;  %s3413_s22 = scalar_lea.vmem %s2260_s21, 2048  ;;  %p3418_p13 = scmp.lt.s32.totalorder %s2260_s21, %s2260_s21 }
 0x34f   :  { %v1315_v60 = vmax.f32 %v1243_v54, 0.0  ;;  %v1246_v4 = vadd.f32 %v2902_v57, %v3706_v24  ;;  %v1237_v47 = vpop.f32.mrb[83].mxu1  ;;  %1555 = vmatprep.mubr.bf16.mxu0 %v3476_v61  ;;  %p3414_p12 = scmp.ne.s32.totalorder %s2260_s21, %s3413_s22  ;;  %p3419_p0 = scmp.lt.s32.totalorder %s3413_s22, %s3413_s22 }
 0x350   :  { %v1238_v8 = vadd.f32 %v3706_v24, %v1237_v47  ;;  %v1313_v59 = vmax.f32 %v1235_v58, 0.0 }
 0x351   :  { %v1316_v31 = vmax.f32 %v1246_v4, 0.0  ;;  %p3420_p1 = por %p3419_p0, %p3418_p13 }
 0x352   :  { %v1314_v62 = vmax.f32 %v1238_v8, 0.0 }
 0x353   :  { %v1338_v63 = vpack.c.bf16 %v1316_v31, %v1315_v60  ;;  %p3421_p2 = pnand %p3420_p1, %p3414_p12 }
 0x354   :  { %v1337_v0 = vpack.c.bf16 %v1314_v62, %v1313_v59  ;;  %v2905_v1 = vpop.f32.mrb[84].mxu1 }
 0x355   :  { %v1259_v2 = vadd.f32 %v2905_v1, %v3706_v24  ;;  %v1250_v3 = vpop.f32.mrb[85].mxu1 }
 0x356   :  { %1556 = vmatmul.mubr.bf16.gmra.mrb[60].mxu0 %v1336_v51  ;;  %v1251_v56 = vadd.f32 %v3706_v24, %v1250_v3  ;;  %v2906_v5 = vpop.f32.mrb[86].mxu1 }
 0x357   :  { %v1319_v6 = vmax.f32 %v1259_v2, 0.0  ;;  %v1262_v7 = vadd.f32 %v2906_v5, %v3706_v24  ;;  %v1253_v9 = vpop.f32.mrb[87].mxu1  ;;  %1565 = vmatprep.mubr.bf16.mxu0 %v3476_v61 }
 0x358   :  { %v1317_v10 = vmax.f32 %v1251_v56, 0.0  ;;  %v1254_v11 = vadd.f32 %v3706_v24, %v1253_v9 }
 0x359   :  { %v1320_v12 = vmax.f32 %v1262_v7, 0.0 }
 0x35a   :  { %v1318_v13 = vmax.f32 %v1254_v11, 0.0 }
 0x35b   :  { %v1340_v14 = vpack.c.bf16 %v1320_v12, %v1319_v6 }
 0x35c   :  { %v1339_v15 = vpack.c.bf16 %v1318_v13, %v1317_v10  ;;  %v2909_v16 = vpop.f32.mrb[88].mxu1 }
 0x35d   :  { %v1275_v17 = vadd.f32 %v2909_v16, %v3706_v24  ;;  %v1266_v18 = vpop.f32.mrb[89].mxu1 }
 0x35e   :  { %1566 = vmatmul.mubr.bf16.gmra.mrb[64].mxu0 %v1337_v0  ;;  %v1267_v19 = vadd.f32 %v3706_v24, %v1266_v18  ;;  %v2910_v20 = vpop.f32.mrb[90].mxu1 }
 0x35f   :  { %1575 = vmatprep.mubr.bf16.mxu0 %v3476_v61  ;;  %v1323_v21 = vmax.f32 %v1275_v17, 0.0  ;;  %v1278_v22 = vadd.f32 %v2910_v20, %v3706_v24  ;;  %v1269_v23 = vpop.f32.mrb[91].mxu1 }
 0x360   :  { %v1321_v25 = vmax.f32 %v1267_v19, 0.0  ;;  %v1270_v26 = vadd.f32 %v3706_v24, %v1269_v23 }
 0x361   :  { %v1324_v27 = vmax.f32 %v1278_v22, 0.0 }
 0x362   :  { %v1322_v28 = vmax.f32 %v1270_v26, 0.0 }
 0x363   :  { %v1342_v29 = vpack.c.bf16 %v1324_v27, %v1323_v21 }
 0x364   :  { %v1341_v30 = vpack.c.bf16 %v1322_v28, %v1321_v25  ;;  %v2913_v32 = vpop.f32.mrb[92].mxu1 }
 0x365   :  { %v1291_v33 = vadd.f32 %v2913_v32, %v3706_v24  ;;  %v1282_v34 = vpop.f32.mrb[93].mxu1 }
 0x366   :  { %1576 = vmatmul.mubr.bf16.gmra.mrb[68].mxu0 %v1338_v63  ;;  %v1283_v35 = vadd.f32 %v3706_v24, %v1282_v34  ;;  %v2914_v36 = vpop.f32.mrb[94].mxu1 }
 0x367   :  { %1585 = vmatprep.mubr.bf16.mxu0 %v3476_v61  ;;  %v1327_v37 = vmax.f32 %v1291_v33, 0.0  ;;  %v1294_v38 = vadd.f32 %v2914_v36, %v3706_v24  ;;  %v1285_v39 = vpop.f32.mrb[95].mxu1 }
 0x368   :  { %v1325_v40 = vmax.f32 %v1283_v35, 0.0  ;;  %v1286_v41 = vadd.f32 %v3706_v24, %v1285_v39  ;;  %v1363_v24 = vlaneseq }
 0x369   :  { %v1328_v42 = vmax.f32 %v1294_v38, 0.0 }
 0x36a   :  { %v1326_v43 = vmax.f32 %v1286_v41, 0.0  ;;  %v1364_v46 = vshrl.u32 %v1363_v24, 7 }
 0x36b   :  { %v1344_v44 = vpack.c.bf16 %v1328_v42, %v1327_v37 }
 0x36c   :  { %v1343_v45 = vpack.c.bf16 %v1326_v43, %v1325_v40  ;;  %v1365_v48 = vsub.s32 0, %v1364_v46  ;;  %v1369_v50 = vsub.s32 1, %v1364_v46 }
 0x36e   :  { %1586 = vmatmul.mubr.bf16.gmra.mrb[72].mxu0 %v1339_v15  ;;  %v3758_v51 = vrot.slane %v1361_v49, %v1365_v48  ;;  %v3760_v52 = vrot.slane %v1361_v49, %v1369_v50 }
 0x36f   :  { %1595 = vmatprep.mubr.bf16.mxu0 %v3476_v61 }
 0x376   :  { %1596 = vmatmul.mubr.bf16.gmra.mrb[76].mxu0 %v1340_v14 }
 0x377   :  { %1605 = vmatprep.mubr.bf16.mxu0 %v3476_v61 }
 0x37e   :  { %1606 = vmatmul.mubr.bf16.gmra.mrb[80].mxu0 %v1341_v30 }
 0x37f   :  { %1615 = vmatprep.mubr.bf16.mxu0 %v3476_v61 }
 0x386   :  { %1616 = vmatmul.mubr.bf16.gmra.mrb[84].mxu0 %v1342_v29 }
 0x387   :  { %1625 = vmatprep.mubr.bf16.mxu0 %v3476_v61 }
 0x38e   :  { %1626 = vmatmul.mubr.bf16.gmra.mrb[88].mxu0 %v1343_v45 }
 0x38f   :  { %1635 = vmatprep.mubr.bf16.mxu0 %v3476_v61 }
 0x396   :  { %1636 = vmatmul.mubr.bf16.gmra.mrb[92].mxu0 %v1344_v44 }
 0x3f1   :  { %v1487_v53 = vpop.f32.mrb[32].mxu0 }
 0x3f2   :  { %v1488_v54 = vadd.f32 %v1487_v53, %v3758_v51  ;;  %v1489_v55 = vpop.f32.mrb[33].mxu0 }
 0x3f3   :  { %v1490_v58 = vadd.f32 %v1489_v55, %v3760_v52  ;;  %v1491_v61 = vpop.f32.mrb[34].mxu0 }
 0x3f4   :  { %v2404_v57 = vmul.f32 -1.442695, %v1488_v54  ;;  %v1492_v60 = vadd.f32 %v1491_v61, %v3758_v51  ;;  %v1493_v4 = vpop.f32.mrb[35].mxu0 }
 0x3f5   :  { %v2405_v47 = vmul.f32 -1.442695, %v1490_v58  ;;  %v1494_v8 = vadd.f32 %v1493_v4, %v3760_v52 }
 0x3f6   :  { %3047 = vpow2.f32 %v2404_v57  ;;  %v2406_v31 = vmul.f32 -1.442695, %v1492_v60 }
 0x3f7   :  { %3049 = vpow2.f32 %v2405_v47  ;;  %v2407_v59 = vmul.f32 -1.442695, %v1494_v8 }
 0x3f8   :  { %3051 = vpow2.f32 %v2406_v31 }
 0x3f9   :  { %3053 = vpow2.f32 %v2407_v59  ;;  %v1497_v62 = vpop.f32.mrb[36].mxu0 }
 0x3fa   :  { %v1498_v63 = vadd.f32 %v1497_v62, %v3758_v51  ;;  %v1499_v0 = vpop.f32.mrb[37].mxu0 }
 0x3fb   :  { %v1500_v1 = vadd.f32 %v1499_v0, %v3760_v52  ;;  %v1501_v2 = vpop.f32.mrb[38].mxu0 }
 0x3fc   :  { %v2408_v3 = vmul.f32 -1.442695, %v1498_v63  ;;  %v1502_v56 = vadd.f32 %v1501_v2, %v3758_v51  ;;  %v1503_v5 = vpop.f32.mrb[39].mxu0 }
 0x3fd   :  { %v2409_v6 = vmul.f32 -1.442695, %v1500_v1  ;;  %v1504_v7 = vadd.f32 %v1503_v5, %v3760_v52 }
 0x3fe   :  { %3055 = vpow2.f32 %v2408_v3  ;;  %v2410_v9 = vmul.f32 -1.442695, %v1502_v56 }
 0x3ff   :  { %3057 = vpow2.f32 %v2409_v6  ;;  %v2411_v10 = vmul.f32 -1.442695, %v1504_v7 }
 0x400   :  { %v3048_v11 = vpop.eup %3047  ;;  %3059 = vpow2.f32 %v2410_v9 }
 0x401   :  { %v3050_v12 = vpop.eup %3049  ;;  %v1838_v13 = vadd.f32 1.0, %v3048_v11  ;;  %3061 = vpow2.f32 %v2411_v10  ;;  %v1507_v14 = vpop.f32.mrb[40].mxu0 }
 0x402   :  { %v3052_v15 = vpop.eup %3051  ;;  %v1839_v16 = vadd.f32 1.0, %v3050_v12  ;;  %v1508_v17 = vadd.f32 %v1507_v14, %v3758_v51  ;;  %v1509_v18 = vpop.f32.mrb[41].mxu0 }
 0x403   :  { %v3054_v19 = vpop.eup %3053  ;;  %3063 = vrcp.f32 %v1838_v13  ;;  %v1840_v20 = vadd.f32 1.0, %v3052_v15  ;;  %v1510_v21 = vadd.f32 %v1509_v18, %v3760_v52  ;;  %v1511_v22 = vpop.f32.mrb[42].mxu0 }
 0x404   :  { %3065 = vrcp.f32 %v1839_v16  ;;  %v1841_v23 = vadd.f32 1.0, %v3054_v19  ;;  %v2412_v25 = vmul.f32 -1.442695, %v1508_v17  ;;  %v1512_v26 = vadd.f32 %v1511_v22, %v3758_v51  ;;  %v1513_v27 = vpop.f32.mrb[43].mxu0 }
 0x405   :  { %3067 = vrcp.f32 %v1840_v20  ;;  %v2413_v28 = vmul.f32 -1.442695, %v1510_v21  ;;  %v1514_v29 = vadd.f32 %v1513_v27, %v3760_v52 }
 0x406   :  { %3069 = vrcp.f32 %v1841_v23  ;;  %v2414_v30 = vmul.f32 -1.442695, %v1512_v26 }
 0x407   :  { %3071 = vpow2.f32 %v2412_v25  ;;  %v2415_v32 = vmul.f32 -1.442695, %v1514_v29 }
 0x408   :  { %v3056_v33 = vpop.eup %3055  ;;  %3073 = vpow2.f32 %v2413_v28 }
 0x409   :  { %v3058_v34 = vpop.eup %3057  ;;  %v1842_v35 = vadd.f32 1.0, %v3056_v33  ;;  %3075 = vpow2.f32 %v2414_v30  ;;  %v1517_v36 = vpop.f32.mrb[44].mxu0 }
 0x40a   :  { %v3060_v37 = vpop.eup %3059  ;;  %v1843_v38 = vadd.f32 1.0, %v3058_v34  ;;  %3077 = vpow2.f32 %v2415_v32  ;;  %v1518_v39 = vadd.f32 %v1517_v36, %v3758_v51  ;;  %v1519_v40 = vpop.f32.mrb[45].mxu0 }
 0x40b   :  { %v3062_v41 = vpop.eup %3061  ;;  %3079 = vrcp.f32 %v1842_v35  ;;  %v1844_v42 = vadd.f32 1.0, %v3060_v37  ;;  %v1520_v43 = vadd.f32 %v1519_v40, %v3760_v52  ;;  %v1521_v44 = vpop.f32.mrb[46].mxu0 }
 0x40c   :  { %3081 = vrcp.f32 %v1843_v38  ;;  %v1845_v45 = vadd.f32 1.0, %v3062_v41  ;;  %v2416_v24 = vmul.f32 -1.442695, %v1518_v39  ;;  %v1522_v46 = vadd.f32 %v1521_v44, %v3758_v51  ;;  %v1523_v48 = vpop.f32.mrb[47].mxu0 }
 0x40d   :  { %v3064_v49 = vpop.eup %3063  ;;  %3083 = vrcp.f32 %v1844_v42  ;;  %v2417_v50 = vmul.f32 -1.442695, %v1520_v43  ;;  %v1524_v53 = vadd.f32 %v1523_v48, %v3760_v52 }
 0x40e   :  { %v3066_v54 = vpop.eup %3065  ;;  %3085 = vrcp.f32 %v1845_v45  ;;  %v2418_v55 = vmul.f32 -1.442695, %v1522_v46 }
 0x40f   :  { %v3068_v58 = vpop.eup %3067  ;;  %v2532_v61 = vpack.c.bf16 %v3066_v54, %v3064_v49  ;;  %3087 = vpow2.f32 %v2416_v24  ;;  %v2419_v57 = vmul.f32 -1.442695, %v1524_v53 }
 0x410   :  { %v3070_v60 = vpop.eup %3069  ;;  %3089 = vpow2.f32 %v2417_v50 }
 0x411   :  { %v3072_v4 = vpop.eup %3071  ;;  %2222 = vst [vmem:[#allocation12] sm:$0xff] %v2532_v61  ;;  %v2533_v47 = vpack.c.bf16 %v3070_v60, %v3068_v58  ;;  %3091 = vpow2.f32 %v2418_v55  ;;  %v1527_v8 = vpop.f32.mrb[48].mxu0 }
 0x412   :  { %v3074_v31 = vpop.eup %3073  ;;  %v1846_v59 = vadd.f32 1.0, %v3072_v4  ;;  %3093 = vpow2.f32 %v2419_v57  ;;  %v1528_v62 = vadd.f32 %v1527_v8, %v3758_v51  ;;  %v1529_v63 = vpop.f32.mrb[49].mxu0 }
 0x413   :  { %3424 = shalt.err (!%p3421_p2)
}
 0x414   :  { %s3425_s30 = scalar_lea.hbm %s3865_s9, 2048 }
 0x415   :  { %p3426_p3 = scmp.ne.s32.totalorder %s3865_s9, %s3425_s30  ;;  %p3429_p4 = scmp.lt.u32.totalorder %s3425_s30, %s3865_s9 }
 0x417   :  { %p3431_p5 = pnand %p3429_p4, %p3426_p3 }
 0x419   :  { %3434 = shalt.err (!%p3431_p5)
}
 0x41a   :  { %2265 = dma.vmem_to_hbm [thread:$0]  %s2260_s21, 2048, %s3865_s9, [#allocation4], %s3468_s23, %s3468_s23, %s3469_s24   ;;  %v3076_v0 = vpop.eup %3075  ;;  %2223 = vst [vmem:[#allocation12 + $0x8] sm:$0xff] %v2533_v47  ;;  %v1847_v1 = vadd.f32 1.0, %v3074_v31  ;;  %v1530_v2 = vadd.f32 %v1529_v63, %v3760_v52  ;;  %v1531_v3 = vpop.f32.mrb[50].mxu0  ;;  %3095 = vrcp.f32 %v1846_v59 }
 0x41b   :  { %v3078_v56 = vpop.eup %3077  ;;  %v1848_v5 = vadd.f32 1.0, %v3076_v0  ;;  %v2420_v6 = vmul.f32 -1.442695, %v1528_v62  ;;  %v1532_v7 = vadd.f32 %v1531_v3, %v3758_v51  ;;  %v1533_v9 = vpop.f32.mrb[51].mxu0  ;;  %s3478_s9 = smov [#allocation12]  }
 0x41c   :  { %v3080_v10 = vpop.eup %3079  ;;  %3097 = vrcp.f32 %v1847_v1  ;;  %v1849_v11 = vadd.f32 1.0, %v3078_v56  ;;  %v2421_v12 = vmul.f32 -1.442695, %v1530_v2  ;;  %v1534_v13 = vadd.f32 %v1533_v9, %v3760_v52  ;;  %v1537_v22 = vpop.f32.mrb[52].mxu0  ;;  %s2271_s23 = sshll.u32 %s3478_s9, 4  ;;  %s2272_s23 = int_to_ptr.vmem [resolvable:$true] %s2271_s23 }
 0x41d   :  { %v3082_v14 = vpop.eup %3081  ;;  %3099 = vrcp.f32 %v1848_v5  ;;  %v2422_v15 = vmul.f32 -1.442695, %v1532_v7  ;;  %v1538_v26 = vadd.f32 %v1537_v22, %v3758_v51  ;;  %v1539_v27 = vpop.f32.mrb[53].mxu0  ;;  %s3435_s24 = scalar_lea.vmem %s2272_s23, 4096  ;;  %p3440_p7 = scmp.lt.s32.totalorder %s2272_s23, %s2272_s23 }
 0x41e   :  { %v3084_v16 = vpop.eup %3083  ;;  %v2534_v17 = vpack.c.bf16 %v3082_v14, %v3080_v10  ;;  %3101 = vrcp.f32 %v1849_v11  ;;  %v2423_v18 = vmul.f32 -1.442695, %v1534_v13  ;;  %v1540_v30 = vadd.f32 %v1539_v27, %v3760_v52  ;;  %v1541_v32 = vpop.f32.mrb[54].mxu0  ;;  %p3436_p6 = scmp.ne.s32.totalorder %s2272_s23, %s3435_s24  ;;  %p3441_p8 = scmp.lt.s32.totalorder %s3435_s24, %s3435_s24 }
 0x41f   :  { %v3086_v19 = vpop.eup %3085  ;;  %3103 = vpow2.f32 %v2420_v6  ;;  %v2424_v35 = vmul.f32 -1.442695, %v1538_v26  ;;  %v1542_v36 = vadd.f32 %v1541_v32, %v3758_v51  ;;  %v1543_v37 = vpop.f32.mrb[55].mxu0 }
 0x420   :  { %v3088_v20 = vpop.eup %3087  ;;  %2224 = vst [vmem:[#allocation12 + $0x10] sm:$0xff] %v2534_v17  ;;  %v2535_v21 = vpack.c.bf16 %v3086_v19, %v3084_v16  ;;  %3105 = vpow2.f32 %v2421_v12  ;;  %v2425_v39 = vmul.f32 -1.442695, %v1540_v30  ;;  %v1544_v40 = vadd.f32 %v1543_v37, %v3760_v52  ;;  %p3442_p9 = por %p3441_p8, %p3440_p7 }
 0x421   :  { %v3090_v23 = vpop.eup %3089  ;;  %v1850_v25 = vadd.f32 1.0, %v3088_v20  ;;  %3107 = vpow2.f32 %v2422_v15  ;;  %v2426_v42 = vmul.f32 -1.442695, %v1542_v36  ;;  %v1547_v48 = vpop.f32.mrb[56].mxu0 }
 0x422   :  { %v3092_v28 = vpop.eup %3091  ;;  %2225 = vst [vmem:[#allocation12 + $0x18] sm:$0xff] %v2535_v21  ;;  %v1851_v29 = vadd.f32 1.0, %v3090_v23  ;;  %3109 = vpow2.f32 %v2423_v18  ;;  %v2427_v44 = vmul.f32 -1.442695, %v1544_v40  ;;  %v1548_v53 = vadd.f32 %v1547_v48, %v3758_v51  ;;  %v1549_v54 = vpop.f32.mrb[57].mxu0  ;;  %p3443_p10 = pnand %p3442_p9, %p3436_p6 }
 0x423   :  { %v3094_v33 = vpop.eup %3093  ;;  %3111 = vrcp.f32 %v1850_v25  ;;  %v1852_v34 = vadd.f32 1.0, %v3092_v28  ;;  %v1550_v61 = vadd.f32 %v1549_v54, %v3760_v52  ;;  %v1551_v57 = vpop.f32.mrb[58].mxu0 }
 0x424   :  { %3113 = vrcp.f32 %v1851_v29  ;;  %v1853_v38 = vadd.f32 1.0, %v3094_v33  ;;  %v3096_v41 = vpop.eup %3095  ;;  %v1552_v47 = vadd.f32 %v1551_v57, %v3758_v51  ;;  %v1553_v8 = vpop.f32.mrb[59].mxu0  ;;  %v2428_v62 = vmul.f32 -1.442695, %v1548_v53 }
 0x425   :  { %3115 = vrcp.f32 %v1852_v34  ;;  %v1554_v63 = vadd.f32 %v1553_v8, %v3760_v52  ;;  %v2429_v2 = vmul.f32 -1.442695, %v1550_v61 }
 0x426   :  { %v3098_v43 = vpop.eup %3097  ;;  %3117 = vrcp.f32 %v1853_v38  ;;  %v2430_v56 = vmul.f32 -1.442695, %v1552_v47 }
 0x427   :  { %v3100_v45 = vpop.eup %3099  ;;  %v2536_v24 = vpack.c.bf16 %v3098_v43, %v3096_v41  ;;  %3119 = vpow2.f32 %v2424_v35  ;;  %v2431_v7 = vmul.f32 -1.442695, %v1554_v63 }
 0x428   :  { %v3102_v46 = vpop.eup %3101  ;;  %3121 = vpow2.f32 %v2425_v39 }
 0x429   :  { %v3104_v49 = vpop.eup %3103  ;;  %2226 = vst [vmem:[#allocation12 + $0x20] sm:$0xff] %v2536_v24  ;;  %v2537_v50 = vpack.c.bf16 %v3102_v46, %v3100_v45  ;;  %3123 = vpow2.f32 %v2426_v42  ;;  %v1557_v10 = vpop.f32.mrb[60].mxu0 }
 0x42a   :  { %v3106_v55 = vpop.eup %3105  ;;  %v1854_v58 = vadd.f32 1.0, %v3104_v49  ;;  %3125 = vpow2.f32 %v2427_v44  ;;  %v1558_v13 = vadd.f32 %v1557_v10, %v3758_v51  ;;  %v1559_v14 = vpop.f32.mrb[61].mxu0 }
 0x42b   :  { %v3108_v60 = vpop.eup %3107  ;;  %2227 = vst [vmem:[#allocation12 + $0x28] sm:$0xff] %v2537_v50  ;;  %v1855_v4 = vadd.f32 1.0, %v3106_v55  ;;  %v1560_v17 = vadd.f32 %v1559_v14, %v3760_v52  ;;  %v1561_v18 = vpop.f32.mrb[62].mxu0 }
 0x42c   :  { %v3110_v31 = vpop.eup %3109  ;;  %3127 = vrcp.f32 %v1854_v58  ;;  %v1856_v59 = vadd.f32 1.0, %v3108_v60  ;;  %v1562_v21 = vadd.f32 %v1561_v18, %v3758_v51  ;;  %v1563_v22 = vpop.f32.mrb[63].mxu0  ;;  %v2432_v26 = vmul.f32 -1.442695, %v1558_v13 }
 0x42d   :  { %v3112_v0 = vpop.eup %3111  ;;  %3129 = vrcp.f32 %v1855_v4  ;;  %v1857_v1 = vadd.f32 1.0, %v3110_v31  ;;  %v1564_v27 = vadd.f32 %v1563_v22, %v3760_v52  ;;  %v2433_v29 = vmul.f32 -1.442695, %v1560_v17 }
 0x42e   :  { %v3114_v3 = vpop.eup %3113  ;;  %3131 = vrcp.f32 %v1856_v59  ;;  %v2434_v32 = vmul.f32 -1.442695, %v1562_v21 }
 0x42f   :  { %v3116_v5 = vpop.eup %3115  ;;  %v2538_v6 = vpack.c.bf16 %v3114_v3, %v3112_v0  ;;  %3133 = vrcp.f32 %v1857_v1  ;;  %v2435_v34 = vmul.f32 -1.442695, %v1564_v27 }
 0x430   :  { %v3118_v9 = vpop.eup %3117  ;;  %3135 = vpow2.f32 %v2428_v62 }
 0x431   :  { %v3120_v11 = vpop.eup %3119  ;;  %2228 = vst [vmem:[#allocation12 + $0x30] sm:$0xff] %v2538_v6  ;;  %v2539_v12 = vpack.c.bf16 %v3118_v9, %v3116_v5  ;;  %3137 = vpow2.f32 %v2429_v2  ;;  %v1567_v37 = vpop.f32.mrb[64].mxu0 }
 0x432   :  { %v3122_v15 = vpop.eup %3121  ;;  %v1858_v16 = vadd.f32 1.0, %v3120_v11  ;;  %3139 = vpow2.f32 %v2430_v56  ;;  %v1568_v39 = vadd.f32 %v1567_v37, %v3758_v51  ;;  %v1569_v40 = vpop.f32.mrb[65].mxu0 }
 0x433   :  { %v3124_v19 = vpop.eup %3123  ;;  %2229 = vst [vmem:[#allocation12 + $0x38] sm:$0xff] %v2539_v12  ;;  %v1859_v20 = vadd.f32 1.0, %v3122_v15  ;;  %3141 = vpow2.f32 %v2431_v7  ;;  %v1570_v43 = vadd.f32 %v1569_v40, %v3760_v52  ;;  %v1571_v44 = vpop.f32.mrb[66].mxu0 }
 0x434   :  { %v3126_v23 = vpop.eup %3125  ;;  %3143 = vrcp.f32 %v1858_v16  ;;  %v1860_v25 = vadd.f32 1.0, %v3124_v19  ;;  %v1572_v46 = vadd.f32 %v1571_v44, %v3758_v51  ;;  %v1573_v48 = vpop.f32.mrb[67].mxu0  ;;  %v2436_v58 = vmul.f32 -1.442695, %v1568_v39 }
 0x435   :  { %3145 = vrcp.f32 %v1859_v20  ;;  %v1861_v28 = vadd.f32 1.0, %v3126_v23  ;;  %v1574_v53 = vadd.f32 %v1573_v48, %v3760_v52  ;;  %v2437_v60 = vmul.f32 -1.442695, %v1570_v43 }
 0x436   :  { %v3128_v30 = vpop.eup %3127  ;;  %3147 = vrcp.f32 %v1860_v25  ;;  %v2438_v47 = vmul.f32 -1.442695, %v1572_v46 }
 0x437   :  { %v3130_v33 = vpop.eup %3129  ;;  %3149 = vrcp.f32 %v1861_v28  ;;  %v2439_v59 = vmul.f32 -1.442695, %v1574_v53 }
 0x438   :  { %v3132_v35 = vpop.eup %3131  ;;  %v2540_v36 = vpack.c.bf16 %v3130_v33, %v3128_v30  ;;  %3151 = vpow2.f32 %v2432_v26 }
 0x439   :  { %v3134_v38 = vpop.eup %3133  ;;  %3153 = vpow2.f32 %v2433_v29  ;;  %v1577_v62 = vpop.f32.mrb[68].mxu0 }
 0x43a   :  { %v3136_v41 = vpop.eup %3135  ;;  %2230 = vst [vmem:[#allocation12 + $0x40] sm:$0xff] %v2540_v36  ;;  %v2541_v42 = vpack.c.bf16 %v3134_v38, %v3132_v35  ;;  %3155 = vpow2.f32 %v2434_v32  ;;  %v1578_v0 = vadd.f32 %v1577_v62, %v3758_v51  ;;  %v1579_v1 = vpop.f32.mrb[69].mxu0 }
 0x43b   :  { %v3138_v45 = vpop.eup %3137  ;;  %v1862_v24 = vadd.f32 1.0, %v3136_v41  ;;  %3157 = vpow2.f32 %v2435_v34  ;;  %v1580_v56 = vadd.f32 %v1579_v1, %v3760_v52  ;;  %v1581_v5 = vpop.f32.mrb[70].mxu0 }
 0x43c   :  { %v3140_v49 = vpop.eup %3139  ;;  %2231 = vst [vmem:[#allocation12 + $0x48] sm:$0xff] %v2541_v42  ;;  %v1863_v50 = vadd.f32 1.0, %v3138_v45  ;;  %v1582_v9 = vadd.f32 %v1581_v5, %v3758_v51  ;;  %v1583_v10 = vpop.f32.mrb[71].mxu0  ;;  %v2440_v16 = vmul.f32 -1.442695, %v1578_v0 }
 0x43d   :  { %v3142_v54 = vpop.eup %3141  ;;  %3159 = vrcp.f32 %v1862_v24  ;;  %v1864_v55 = vadd.f32 1.0, %v3140_v49  ;;  %v1584_v13 = vadd.f32 %v1583_v10, %v3760_v52  ;;  %v2441_v18 = vmul.f32 -1.442695, %v1580_v56 }
 0x43e   :  { %v3144_v61 = vpop.eup %3143  ;;  %3161 = vrcp.f32 %v1863_v50  ;;  %v1865_v57 = vadd.f32 1.0, %v3142_v54  ;;  %v2442_v20 = vmul.f32 -1.442695, %v1582_v9 }
 0x43f   :  { %v3146_v4 = vpop.eup %3145  ;;  %3163 = vrcp.f32 %v1864_v55  ;;  %v2443_v22 = vmul.f32 -1.442695, %v1584_v13 }
 0x440   :  { %v3148_v8 = vpop.eup %3147  ;;  %v2542_v31 = vpack.c.bf16 %v3146_v4, %v3144_v61  ;;  %3165 = vrcp.f32 %v1865_v57 }
 0x441   :  { %v3150_v63 = vpop.eup %3149  ;;  %3167 = vpow2.f32 %v2436_v58  ;;  %v1587_v23 = vpop.f32.mrb[72].mxu0 }
 0x442   :  { %v3152_v2 = vpop.eup %3151  ;;  %2232 = vst [vmem:[#allocation12 + $0x50] sm:$0xff] %v2542_v31  ;;  %v2543_v3 = vpack.c.bf16 %v3150_v63, %v3148_v8  ;;  %3169 = vpow2.f32 %v2437_v60  ;;  %v1588_v27 = vadd.f32 %v1587_v23, %v3758_v51  ;;  %v1589_v28 = vpop.f32.mrb[73].mxu0 }
 0x443   :  { %v3154_v6 = vpop.eup %3153  ;;  %v1866_v7 = vadd.f32 1.0, %v3152_v2  ;;  %3171 = vpow2.f32 %v2438_v47  ;;  %v1590_v30 = vadd.f32 %v1589_v28, %v3760_v52  ;;  %v1591_v32 = vpop.f32.mrb[74].mxu0 }
 0x444   :  { %v3156_v11 = vpop.eup %3155  ;;  %2233 = vst [vmem:[#allocation12 + $0x58] sm:$0xff] %v2543_v3  ;;  %v1867_v12 = vadd.f32 1.0, %v3154_v6  ;;  %3173 = vpow2.f32 %v2439_v59  ;;  %v2444_v35 = vmul.f32 -1.442695, %v1588_v27  ;;  %v1592_v36 = vadd.f32 %v1591_v32, %v3758_v51  ;;  %v1593_v37 = vpop.f32.mrb[75].mxu0 }
 0x445   :  { %v3158_v14 = vpop.eup %3157  ;;  %3175 = vrcp.f32 %v1866_v7  ;;  %v1868_v15 = vadd.f32 1.0, %v3156_v11  ;;  %v1594_v40 = vadd.f32 %v1593_v37, %v3760_v52  ;;  %v2445_v45 = vmul.f32 -1.442695, %v1590_v30 }
 0x446   :  { %3177 = vrcp.f32 %v1867_v12  ;;  %v1869_v17 = vadd.f32 1.0, %v3158_v14  ;;  %v2446_v48 = vmul.f32 -1.442695, %v1592_v36 }
 0x447   :  { %v3160_v19 = vpop.eup %3159  ;;  %3179 = vrcp.f32 %v1868_v15  ;;  %v2447_v50 = vmul.f32 -1.442695, %v1594_v40 }
 0x448   :  { %v3162_v21 = vpop.eup %3161  ;;  %3181 = vrcp.f32 %v1869_v17 }
 0x449   :  { %v3164_v25 = vpop.eup %3163  ;;  %v2544_v26 = vpack.c.bf16 %v3162_v21, %v3160_v19  ;;  %3183 = vpow2.f32 %v2440_v16  ;;  %v1597_v53 = vpop.f32.mrb[76].mxu0 }
 0x44a   :  { %v3166_v29 = vpop.eup %3165  ;;  %3185 = vpow2.f32 %v2441_v18  ;;  %v1598_v58 = vadd.f32 %v1597_v53, %v3758_v51  ;;  %v1599_v61 = vpop.f32.mrb[77].mxu0 }
 0x44b   :  { %v3168_v33 = vpop.eup %3167  ;;  %2234 = vst [vmem:[#allocation12 + $0x60] sm:$0xff] %v2544_v26  ;;  %v2545_v34 = vpack.c.bf16 %v3166_v29, %v3164_v25  ;;  %3187 = vpow2.f32 %v2442_v20  ;;  %v1601_v60 = vpop.f32.mrb[78].mxu0  ;;  %v1600_v31 = vadd.f32 %v1599_v61, %v3760_v52 }
 0x44c   :  { %v3170_v38 = vpop.eup %3169  ;;  %v1870_v39 = vadd.f32 1.0, %v3168_v33  ;;  %3189 = vpow2.f32 %v2443_v22  ;;  %v2448_v8 = vmul.f32 -1.442695, %v1598_v58  ;;  %v1603_v59 = vpop.f32.mrb[79].mxu0  ;;  %v1602_v0 = vadd.f32 %v1601_v60, %v3758_v51 }
 0x44d   :  { %v3172_v41 = vpop.eup %3171  ;;  %2235 = vst [vmem:[#allocation12 + $0x68] sm:$0xff] %v2545_v34  ;;  %v1871_v42 = vadd.f32 1.0, %v3170_v38  ;;  %3191 = vpow2.f32 %v2444_v35  ;;  %v1604_v3 = vadd.f32 %v1603_v59, %v3760_v52  ;;  %v2449_v9 = vmul.f32 -1.442695, %v1600_v31 }
 0x44e   :  { %v3174_v43 = vpop.eup %3173  ;;  %3193 = vrcp.f32 %v1870_v39  ;;  %v1872_v44 = vadd.f32 1.0, %v3172_v41  ;;  %v2450_v12 = vmul.f32 -1.442695, %v1602_v0 }
 0x44f   :  { %v3176_v24 = vpop.eup %3175  ;;  %3195 = vrcp.f32 %v1871_v42  ;;  %v1873_v46 = vadd.f32 1.0, %v3174_v43  ;;  %v2451_v15 = vmul.f32 -1.442695, %v1604_v3 }
 0x450   :  { %v3178_v49 = vpop.eup %3177  ;;  %3197 = vrcp.f32 %v1872_v44 }
 0x451   :  { %v3180_v54 = vpop.eup %3179  ;;  %v2546_v55 = vpack.c.bf16 %v3178_v49, %v3176_v24  ;;  %3199 = vrcp.f32 %v1873_v46  ;;  %v1607_v13 = vpop.f32.mrb[80].mxu0 }
 0x452   :  { %v3182_v57 = vpop.eup %3181  ;;  %3201 = vpow2.f32 %v2445_v45  ;;  %v1608_v16 = vadd.f32 %v1607_v13, %v3758_v51  ;;  %v1609_v17 = vpop.f32.mrb[81].mxu0 }
 0x453   :  { %v3184_v4 = vpop.eup %3183  ;;  %2236 = vst [vmem:[#allocation12 + $0x70] sm:$0xff] %v2546_v55  ;;  %v2547_v47 = vpack.c.bf16 %v3182_v57, %v3180_v54  ;;  %3203 = vpow2.f32 %v2446_v48  ;;  %v1611_v20 = vpop.f32.mrb[82].mxu0  ;;  %v1610_v23 = vadd.f32 %v1609_v17, %v3760_v52 }
 0x454   :  { %v3186_v62 = vpop.eup %3185  ;;  %v1874_v63 = vadd.f32 1.0, %v3184_v4  ;;  %3205 = vpow2.f32 %v2447_v50  ;;  %v2452_v22 = vmul.f32 -1.442695, %v1608_v16  ;;  %v1613_v25 = vpop.f32.mrb[83].mxu0  ;;  %v1612_v28 = vadd.f32 %v1611_v20, %v3758_v51 }
 0x455   :  { %v3188_v1 = vpop.eup %3187  ;;  %2237 = vst [vmem:[#allocation12 + $0x78] sm:$0xff] %v2547_v47  ;;  %v1875_v2 = vadd.f32 1.0, %v3186_v62  ;;  %3207 = vpow2.f32 %v2448_v8  ;;  %v1614_v32 = vadd.f32 %v1613_v25, %v3760_v52  ;;  %v2453_v37 = vmul.f32 -1.442695, %v1610_v23 }
 0x456   :  { %v3190_v56 = vpop.eup %3189  ;;  %3209 = vrcp.f32 %v1874_v63  ;;  %v1876_v5 = vadd.f32 1.0, %v3188_v1  ;;  %v2454_v40 = vmul.f32 -1.442695, %v1612_v28 }
 0x457   :  { %v3192_v6 = vpop.eup %3191  ;;  %3211 = vrcp.f32 %v1875_v2  ;;  %v1877_v7 = vadd.f32 1.0, %v3190_v56  ;;  %v2455_v43 = vmul.f32 -1.442695, %v1614_v32 }
 0x458   :  { %v3194_v10 = vpop.eup %3193  ;;  %3213 = vrcp.f32 %v1876_v5  ;;  %v1878_v11 = vadd.f32 1.0, %v3192_v6 }
 0x459   :  { %v3196_v14 = vpop.eup %3195  ;;  %3215 = vrcp.f32 %v1877_v7  ;;  %v1617_v41 = vpop.f32.mrb[84].mxu0 }
 0x45a   :  { %v3198_v18 = vpop.eup %3197  ;;  %v2548_v19 = vpack.c.bf16 %v3196_v14, %v3194_v10  ;;  %3217 = vrcp.f32 %v1878_v11  ;;  %v1618_v44 = vadd.f32 %v1617_v41, %v3758_v51  ;;  %v1619_v45 = vpop.f32.mrb[85].mxu0 }
 0x45b   :  { %v3200_v21 = vpop.eup %3199  ;;  %3219 = vpow2.f32 %v2449_v9  ;;  %v1620_v48 = vadd.f32 %v1619_v45, %v3760_v52  ;;  %v1621_v49 = vpop.f32.mrb[86].mxu0 }
 0x45c   :  { %v3202_v26 = vpop.eup %3201  ;;  %2238 = vst [vmem:[#allocation12 + $0x80] sm:$0xff] %v2548_v19  ;;  %v2549_v27 = vpack.c.bf16 %v3200_v21, %v3198_v18  ;;  %3221 = vpow2.f32 %v2450_v12  ;;  %v2456_v53 = vmul.f32 -1.442695, %v1618_v44  ;;  %v1623_v54 = vpop.f32.mrb[87].mxu0  ;;  %v1622_v57 = vadd.f32 %v1621_v49, %v3758_v51 }
 0x45d   :  { %v3204_v29 = vpop.eup %3203  ;;  %v1879_v30 = vadd.f32 1.0, %v3202_v26  ;;  %3223 = vpow2.f32 %v2451_v15  ;;  %v2457_v61 = vmul.f32 -1.442695, %v1620_v48  ;;  %v1624_v4 = vadd.f32 %v1623_v54, %v3760_v52 }
 0x45e   :  { %v3206_v33 = vpop.eup %3205  ;;  %2239 = vst [vmem:[#allocation12 + $0x88] sm:$0xff] %v2549_v27  ;;  %v1880_v34 = vadd.f32 1.0, %v3204_v29  ;;  %3225 = vpow2.f32 %v2452_v22  ;;  %v2458_v0 = vmul.f32 -1.442695, %v1622_v57 }
 0x45f   :  { %v3208_v35 = vpop.eup %3207  ;;  %3227 = vrcp.f32 %v1879_v30  ;;  %v1881_v36 = vadd.f32 1.0, %v3206_v33  ;;  %v2459_v56 = vmul.f32 -1.442695, %v1624_v4 }
 0x460   :  { %v3210_v38 = vpop.eup %3209  ;;  %3229 = vrcp.f32 %v1880_v34  ;;  %v1882_v39 = vadd.f32 1.0, %v3208_v35 }
 0x461   :  { %v3212_v42 = vpop.eup %3211  ;;  %3231 = vrcp.f32 %v1881_v36  ;;  %v1627_v1 = vpop.f32.mrb[88].mxu0 }
 0x462   :  { %v3214_v24 = vpop.eup %3213  ;;  %v2550_v46 = vpack.c.bf16 %v3212_v42, %v3210_v38  ;;  %3233 = vrcp.f32 %v1882_v39  ;;  %v1628_v5 = vadd.f32 %v1627_v1, %v3758_v51  ;;  %v1629_v6 = vpop.f32.mrb[89].mxu0 }
 0x463   :  { %v3216_v50 = vpop.eup %3215  ;;  %3235 = vpow2.f32 %v2453_v37  ;;  %v1630_v10 = vadd.f32 %v1629_v6, %v3760_v52  ;;  %v1631_v11 = vpop.f32.mrb[90].mxu0 }
 0x464   :  { %v3218_v55 = vpop.eup %3217  ;;  %2240 = vst [vmem:[#allocation12 + $0x90] sm:$0xff] %v2550_v46  ;;  %v2551_v58 = vpack.c.bf16 %v3216_v50, %v3214_v24  ;;  %3237 = vpow2.f32 %v2454_v40  ;;  %v2460_v13 = vmul.f32 -1.442695, %v1628_v5  ;;  %v1633_v14 = vpop.f32.mrb[91].mxu0  ;;  %v1632_v19 = vadd.f32 %v1631_v11, %v3758_v51 }
 0x465   :  { %v3220_v60 = vpop.eup %3219  ;;  %3239 = vpow2.f32 %v2455_v43  ;;  %v2461_v17 = vmul.f32 -1.442695, %v1630_v10  ;;  %v1634_v22 = vadd.f32 %v1633_v14, %v3760_v52 }
 0x466   :  { %v3222_v47 = vpop.eup %3221  ;;  %2241 = vst [vmem:[#allocation12 + $0x98] sm:$0xff] %v2551_v58  ;;  %v1883_v8 = vadd.f32 1.0, %v3220_v60  ;;  %3241 = vpow2.f32 %v2456_v53  ;;  %v2462_v32 = vmul.f32 -1.442695, %v1632_v19 }
 0x467   :  { %v3224_v31 = vpop.eup %3223  ;;  %v1884_v59 = vadd.f32 1.0, %v3222_v47  ;;  %3243 = vpow2.f32 %v2457_v61  ;;  %v2463_v37 = vmul.f32 -1.442695, %v1634_v22 }
 0x468   :  { %v3226_v62 = vpop.eup %3225  ;;  %3245 = vrcp.f32 %v1883_v8  ;;  %v1885_v63 = vadd.f32 1.0, %v3224_v31 }
 0x469   :  { %v3228_v2 = vpop.eup %3227  ;;  %3247 = vrcp.f32 %v1884_v59  ;;  %v1886_v3 = vadd.f32 1.0, %v3226_v62  ;;  %v1637_v28 = vpop.f32.mrb[92].mxu0 }
 0x46a   :  { %v3230_v7 = vpop.eup %3229  ;;  %v2552_v9 = vpack.c.bf16 %v3228_v2, %v3218_v55  ;;  %3249 = vrcp.f32 %v1885_v63  ;;  %v1638_v33 = vadd.f32 %v1637_v28, %v3758_v51  ;;  %v1639_v34 = vpop.f32.mrb[93].mxu0 }
 0x46b   :  { %v3232_v12 = vpop.eup %3231  ;;  %3251 = vrcp.f32 %v1886_v3  ;;  %v1640_v38 = vadd.f32 %v1639_v34, %v3760_v52  ;;  %v1641_v39 = vpop.f32.mrb[94].mxu0 }
 0x46c   :  { %v3234_v15 = vpop.eup %3233  ;;  %2242 = vst [vmem:[#allocation12 + $0xa0] sm:$0xff] %v2552_v9  ;;  %v2553_v16 = vpack.c.bf16 %v3232_v12, %v3230_v7  ;;  %3253 = vpow2.f32 %v2458_v0  ;;  %v2464_v42 = vmul.f32 -1.442695, %v1638_v33  ;;  %v1643_v43 = vpop.f32.mrb[95].mxu0  ;;  %v1642_v48 = vadd.f32 %v1641_v39, %v3758_v51 }
 0x46d   :  { %v3236_v18 = vpop.eup %3235  ;;  %3255 = vpow2.f32 %v2459_v56  ;;  %v2465_v45 = vmul.f32 -1.442695, %v1640_v38  ;;  %v1644_v50 = vadd.f32 %v1643_v43, %v3760_v52 }
 0x46e   :  { %v3238_v20 = vpop.eup %3237  ;;  %2243 = vst [vmem:[#allocation12 + $0xa8] sm:$0xff] %v2553_v16  ;;  %v1887_v21 = vadd.f32 1.0, %v3236_v18  ;;  %3257 = vpow2.f32 %v2460_v13  ;;  %v2466_v60 = vmul.f32 -1.442695, %v1642_v48 }
 0x46f   :  { %v3240_v23 = vpop.eup %3239  ;;  %v1888_v25 = vadd.f32 1.0, %v3238_v20  ;;  %3259 = vpow2.f32 %v2461_v17  ;;  %v2467_v8 = vmul.f32 -1.442695, %v1644_v50 }
 0x470   :  { %v3242_v26 = vpop.eup %3241  ;;  %3261 = vrcp.f32 %v1887_v21  ;;  %v1889_v27 = vadd.f32 1.0, %v3240_v23 }
 0x471   :  { %v3244_v29 = vpop.eup %3243  ;;  %3263 = vrcp.f32 %v1888_v25  ;;  %v1890_v30 = vadd.f32 1.0, %v3242_v26 }
 0x472   :  { %v3246_v35 = vpop.eup %3245  ;;  %3265 = vrcp.f32 %v1889_v27  ;;  %v1891_v36 = vadd.f32 1.0, %v3244_v29 }
 0x473   :  { %v3248_v40 = vpop.eup %3247  ;;  %v2554_v41 = vpack.c.bf16 %v3246_v35, %v3234_v15  ;;  %3267 = vrcp.f32 %v1890_v30 }
 0x474   :  { %v3250_v44 = vpop.eup %3249  ;;  %3269 = vrcp.f32 %v1891_v36 }
 0x475   :  { %v3252_v24 = vpop.eup %3251  ;;  %2244 = vst [vmem:[#allocation12 + $0xb0] sm:$0xff] %v2554_v41  ;;  %v2555_v46 = vpack.c.bf16 %v3250_v44, %v3248_v40  ;;  %3271 = vpow2.f32 %v2462_v32 }
 0x476   :  { %v3254_v49 = vpop.eup %3253  ;;  %3273 = vpow2.f32 %v2463_v37 }
 0x477   :  { %v3256_v53 = vpop.eup %3255  ;;  %2245 = vst [vmem:[#allocation12 + $0xb8] sm:$0xff] %v2555_v46  ;;  %v1892_v54 = vadd.f32 1.0, %v3254_v49  ;;  %3275 = vpow2.f32 %v2464_v42 }
 0x478   :  { %v3258_v55 = vpop.eup %3257  ;;  %v1893_v58 = vadd.f32 1.0, %v3256_v53  ;;  %3277 = vpow2.f32 %v2465_v45 }
 0x479   :  { %v3260_v61 = vpop.eup %3259  ;;  %3279 = vrcp.f32 %v1892_v54  ;;  %v1894_v57 = vadd.f32 1.0, %v3258_v55 }
 0x47a   :  { %v3262_v4 = vpop.eup %3261  ;;  %3281 = vrcp.f32 %v1893_v58  ;;  %v1895_v47 = vadd.f32 1.0, %v3260_v61 }
 0x47b   :  { %v3264_v51 = vpop.eup %3263  ;;  %v2556_v31 = vpack.c.bf16 %v3262_v4, %v3252_v24  ;;  %3283 = vrcp.f32 %v1894_v57 }
 0x47c   :  { %v3266_v59 = vpop.eup %3265  ;;  %3285 = vrcp.f32 %v1895_v47 }
 0x47d   :  { %v3268_v52 = vpop.eup %3267  ;;  %2246 = vst [vmem:[#allocation12 + $0xc0] sm:$0xff] %v2556_v31  ;;  %v2557_v62 = vpack.c.bf16 %v3266_v59, %v3264_v51  ;;  %3287 = vpow2.f32 %v2466_v60 }
 0x47e   :  { %v3270_v63 = vpop.eup %3269  ;;  %3289 = vpow2.f32 %v2467_v8 }
 0x47f   :  { %v3272_v0 = vpop.eup %3271  ;;  %2247 = vst [vmem:[#allocation12 + $0xc8] sm:$0xff] %v2557_v62  ;;  %v2558_v1 = vpack.c.bf16 %v3270_v63, %v3268_v52 }
 0x480   :  { %v3274_v2 = vpop.eup %3273  ;;  %v1896_v3 = vadd.f32 1.0, %v3272_v0 }
 0x481   :  { %v3276_v56 = vpop.eup %3275  ;;  %2248 = vst [vmem:[#allocation12 + $0xd0] sm:$0xff] %v2558_v1  ;;  %v1897_v5 = vadd.f32 1.0, %v3274_v2 }
 0x482   :  { %v3278_v6 = vpop.eup %3277  ;;  %3291 = vrcp.f32 %v1896_v3  ;;  %v1898_v7 = vadd.f32 1.0, %v3276_v56 }
 0x483   :  { %v3280_v9 = vpop.eup %3279  ;;  %3293 = vrcp.f32 %v1897_v5  ;;  %v1899_v10 = vadd.f32 1.0, %v3278_v6 }
 0x484   :  { %v3282_v11 = vpop.eup %3281  ;;  %3295 = vrcp.f32 %v1898_v7 }
 0x485   :  { %v3284_v12 = vpop.eup %3283  ;;  %v2559_v13 = vpack.c.bf16 %v3282_v11, %v3280_v9  ;;  %3297 = vrcp.f32 %v1899_v10 }
 0x486   :  { %v3286_v14 = vpop.eup %3285 }
 0x487   :  { %v3288_v15 = vpop.eup %3287  ;;  %2249 = vst [vmem:[#allocation12 + $0xd8] sm:$0xff] %v2559_v13  ;;  %v2560_v16 = vpack.c.bf16 %v3286_v14, %v3284_v12 }
 0x488   :  { %v3290_v17 = vpop.eup %3289  ;;  %v1900_v18 = vadd.f32 1.0, %v3288_v15 }
 0x489   :  { %2250 = vst [vmem:[#allocation12 + $0xe0] sm:$0xff] %v2560_v16  ;;  %v1901_v19 = vadd.f32 1.0, %v3290_v17 }
 0x48a   :  { %3299 = vrcp.f32 %v1900_v18 }
 0x48b   :  { %3301 = vrcp.f32 %v1901_v19 }
 0x48c   :  { %v3292_v20 = vpop.eup %3291 }
 0x48d   :  { %v3294_v21 = vpop.eup %3293 }
 0x48e   :  { %v3296_v22 = vpop.eup %3295  ;;  %v2561_v23 = vpack.c.bf16 %v3294_v21, %v3292_v20 }
 0x48f   :  { %v3298_v25 = vpop.eup %3297 }
 0x490   :  { %2251 = vst [vmem:[#allocation12 + $0xe8] sm:$0xff] %v2561_v23  ;;  %v2562_v26 = vpack.c.bf16 %v3298_v25, %v3296_v22 }
 0x492   :  { %2252 = vst [vmem:[#allocation12 + $0xf0] sm:$0xff] %v2562_v26 }
 0x494   :  { %v3300_v27 = vpop.eup %3299 }
 0x495   :  { %v3302_v28 = vpop.eup %3301 }
 0x496   :  { %v2563_v29 = vpack.c.bf16 %v3302_v28, %v3300_v27 }
 0x498   :  { %2253 = vst [vmem:[#allocation12 + $0xf8] sm:$0xff] %v2563_v29 }
 0x499   :  { %3446 = shalt.err (!%p3443_p10)
}
 0x49a   :  { %s3447_s1 = scalar_lea.hbm %s3866_s10, 4096 }
 0x49b   :  { %p3448_p11 = scmp.ne.s32.totalorder %s3866_s10, %s3447_s1  ;;  %p3451_p12 = scmp.lt.u32.totalorder %s3447_s1, %s3866_s10 }
 0x49d   :  { %p3453_p13 = pnand %p3451_p12, %p3448_p11 }
 0x49f   :  { %3456 = shalt.err (!%p3453_p13)
}
 0x4a0   :  { %2277 = dma.vmem_to_hbm [thread:$0]  %s2272_s23, 4096, %s3866_s10, [#allocation13], %s3472_s3, %s3472_s3, %s3473_s28  }
 0x4a1   :  { %3463 = dma.done.wait [#allocation4], 2048  }
 0x4a2   :  { %3464 = vsyncadd [#allocation4], 4294965248 }
 0x4a3   :  { %3465 = dma.done.wait [#allocation13], 4096  }
 0x4a4   :  { %3466 = vsyncadd [#allocation13], 4294963200 }
 0x4a5   :  { %2284 = vsyncpa [#allocation3], 1 }
 0x4a6   :  { %2285 = vsyncpa [#allocation6], 1 }
 0x4a7   :  { %2286 = vsyncpa [#allocation9], 1 }
 0x4a8   :  { %2287 = vsyncpa [#allocation4], 1 }
 0x4a9   :  { %2288 = vsyncpa [#allocation13], 1 }

</bundles_post_ra>
